<compile_context>
chip_gen: v7x
topology: tpu7x:2x2x1
jax: 0.10.0
libtpu: 0.0.40
codegen_flags: <defaults>
</compile_context>

<pallas_src>
import jax
import jax.numpy as jnp
from jax.experimental import pallas as pl
from jax.experimental.pallas import tpu as pltpu

BN_EPS = 1e-5

NUM_BOND_TYPE = 5
NUM_BOND_DIRECTION = 3
NUM_ATOM_TYPE = 119
NUM_CHIRALITY_TAG = 3

OUT_PAD = 128  # lane-dense padding for the pred-head tail


def _softplus(x):
    # numerically-stable softplus (matches torch.nn.Softplus semantics)
    return jnp.maximum(x, 0.0) + jnp.log(1.0 + jnp.exp(-jnp.abs(x)))


# --------------------------------- kernel -----------------------------------

def gae_kernel(h0_ref, A_ref, eagg_ref,
               w1_ref, b1_ref, w2_ref, b2_ref, gamma_ref, beta_ref,
               P_ref,
               wd1_ref, bd1_ref, wd2_ref, bd2_ref,
               wp1_ref, bp1_ref, wp2_ref, bp2_ref,
               hdec_ref, out_ref,
               h_scr, hn_scr):
    l = pl.program_id(0)          # layer index   ("arbitrary": sequential dep)
    t = pl.program_id(1)          # node-row tile ("arbitrary": BN dep)
    num_layer = pl.num_programs(0)
    num_tiles = pl.num_programs(1)
    TM = A_ref.shape[0]           # static row-tile size

    # Initialize the resident bf16 node-feature accumulator once.
    @pl.when(jnp.logical_and(l == 0, t == 0))
    def _():
        h_scr[...] = h0_ref[...]

    # --- per row tile: GINE aggregation + MLP (bf16 MXU operands, f32 acc) ---
    # aggr[dst] = sum_e (h[src(e)] + edge_emb[e]) = A_tile @ h + edge_agg_tile
    aggr = jnp.dot(A_ref[...], h_scr[...], preferred_element_type=jnp.float32)
    aggr_bf = aggr.astype(jnp.bfloat16) + eagg_ref[...]          # bf16 add (no upcast)

    hid = jnp.dot(aggr_bf, w1_ref[...],
                  preferred_element_type=jnp.float32) + b1_ref[...]
    hid = jnp.maximum(hid, 0.0)
    hn_tile = jnp.dot(hid.astype(jnp.bfloat16), w2_ref[...],
                      preferred_element_type=jnp.float32) + b2_ref[...]

    row0 = pl.multiple_of(t * TM, TM)
    hn_scr[pl.ds(row0, TM), :] = hn_tile                         # stage pre-BN rows

    # --- layer epilogue on the last row tile: BatchNorm + (ReLU | head) ---
    @pl.when(t == num_tiles - 1)
    def _():
        hn = hn_scr[...]                                         # f32 [N, d]
        inv_n = 1.0 / hn.shape[0]
        # two-pass stats (avoids E[x^2]-mean^2 cancellation), folded scale/shift
        mean = jnp.sum(hn, axis=0, keepdims=True) * inv_n
        xm = hn - mean
        var = jnp.sum(xm * xm, axis=0, keepdims=True) * inv_n
        scale = gamma_ref[...] * jax.lax.rsqrt(var + BN_EPS)
        hn_norm = xm * scale + beta_ref[...]

        is_last = l == num_layer - 1

        # Not-last layers: ReLU (dropout identity at drop_ratio=0), keep h resident.
        @pl.when(jnp.logical_not(is_last))
        def _():
            h_scr[...] = jnp.maximum(hn_norm, 0.0).astype(jnp.bfloat16)

        # Last layer: no ReLU; pool + decoder + pred head (bf16 MXU, f32 acc).
        @pl.when(is_last)
        def _():
            pooled = jnp.dot(P_ref[...], hn_norm.astype(jnp.bfloat16),
                             preferred_element_type=jnp.float32)

            # Decoder: Linear -> ReLU -> (Dropout: identity) -> Linear
            d1 = jnp.maximum(
                jnp.dot(pooled.astype(jnp.bfloat16), wd1_ref[...],
                        preferred_element_type=jnp.float32) + bd1_ref[...], 0.0)
            hdec = jnp.dot(d1.astype(jnp.bfloat16), wd2_ref[...],
                           preferred_element_type=jnp.float32) + bd2_ref[...]

            # pred_head: Linear -> Softplus -> Linear (lane-padded to 128 outputs)
            p1 = _softplus(
                jnp.dot(hdec.astype(jnp.bfloat16), wp1_ref[...],
                        preferred_element_type=jnp.float32) + bp1_ref[...])
            out = jnp.dot(p1.astype(jnp.bfloat16), wp2_ref[...],
                          preferred_element_type=jnp.float32) + bp2_ref[...]

            hdec_ref[...] = hdec
            out_ref[...] = out


# ----------------------------- parameter setup ------------------------------

def _xavier_uniform(key, shape):
    fan_in, fan_out = shape[0], shape[1]
    bound = jnp.sqrt(6.0 / (fan_in + fan_out))
    return jax.random.uniform(key, shape, jnp.float32, -bound, bound)


def _linear(key, in_dim, out_dim):
    kw, kb = jax.random.split(key)
    bound = 1.0 / jnp.sqrt(in_dim)
    W = jax.random.uniform(kw, (in_dim, out_dim), jnp.float32, -bound, bound)
    b = jax.random.uniform(kb, (1, out_dim), jnp.float32, -bound, bound)
    return W, b


def make_params(key, num_layer, emb_dim, feat_dim, dec_hidden=128):
    keys = iter(jax.random.split(key, 64))
    p = {}
    p["x_emb1"] = _xavier_uniform(next(keys), (NUM_ATOM_TYPE, emb_dim))
    p["x_emb2"] = _xavier_uniform(next(keys), (NUM_CHIRALITY_TAG, emb_dim))
    p["edge_emb1"] = jnp.stack(
        [_xavier_uniform(next(keys), (NUM_BOND_TYPE, emb_dim)) for _ in range(num_layer)])
    p["edge_emb2"] = jnp.stack(
        [_xavier_uniform(next(keys), (NUM_BOND_DIRECTION, emb_dim)) for _ in range(num_layer)])

    w1, b1, w2, b2 = [], [], [], []
    for _ in range(num_layer):
        W, b = _linear(next(keys), emb_dim, 2 * emb_dim)
        w1.append(W); b1.append(b)
        W, b = _linear(next(keys), 2 * emb_dim, emb_dim)
        w2.append(W); b2.append(b)
    # GINE MLP weights stored bf16 (MXU operands); biases / BN affine stay f32.
    p["w1"] = jnp.stack(w1).astype(jnp.bfloat16)   # [L, d, 2d]
    p["b1"] = jnp.stack(b1)                        # [L, 1, 2d]
    p["w2"] = jnp.stack(w2).astype(jnp.bfloat16)   # [L, 2d, d]
    p["b2"] = jnp.stack(b2)                        # [L, 1, d]
    p["gamma"] = jnp.ones((num_layer, 1, emb_dim), jnp.float32)
    p["beta"] = jnp.zeros((num_layer, 1, emb_dim), jnp.float32)

    p["wd1"], p["bd1"] = _linear(next(keys), emb_dim, dec_hidden)
    p["wd2"], p["bd2"] = _linear(next(keys), dec_hidden, feat_dim)
    p["wp1"], p["bp1"] = _linear(next(keys), feat_dim, feat_dim // 2)
    p["wp2"], p["bp2"] = _linear(next(keys), feat_dim // 2, 2)
    return p


# --------------------------------- wrapper ----------------------------------

def graph_autoencoder_forward(params, x, edge_index, edge_attr, batch, num_graphs,
                              row_tile=128):
    """x: [N,2] int32, edge_index: [2,E] int32, edge_attr: [E,2] int32, batch: [N] int32."""
    N = x.shape[0]
    num_layer = params["w1"].shape[0]
    emb_dim = params["w1"].shape[1]
    hid2 = params["w1"].shape[2]
    dec_hidden = params["wd1"].shape[1]
    feat_dim = params["wd2"].shape[1]
    half = params["wp1"].shape[1]

    # node-row tiling of the aggregation
    TM = row_tile if (N % row_tile == 0 and N >= row_tile) else N
    NT = N // TM

    # --- glue (embedding gathers, graph -> dense operators) ---
    h0 = (params["x_emb1"][x[:, 0]] + params["x_emb2"][x[:, 1]]).astype(jnp.bfloat16)

    # add self loops: attr = [4, 0]
    self_idx = jnp.arange(N, dtype=edge_index.dtype)
    src = jnp.concatenate([edge_index[0], self_idx])
    dst = jnp.concatenate([edge_index[1], self_idx])
    self_attr = jnp.concatenate(
        [jnp.full((N, 1), 4, edge_attr.dtype), jnp.zeros((N, 1), edge_attr.dtype)], axis=1)
    ea = jnp.concatenate([edge_attr, self_attr], axis=0)

    # dense adjacency A[dst, src]; small integer counts are exact in bf16
    A = jnp.zeros((N, N), jnp.float32).at[dst, src].add(1.0).astype(jnp.bfloat16)

    # per-layer per-dst sum of edge embeddings (computed f32, stored bf16)
    edge_agg = []
    for l in range(num_layer):
        e_emb = params["edge_emb1"][l][ea[:, 0]] + params["edge_emb2"][l][ea[:, 1]]
        edge_agg.append(jnp.zeros((N, emb_dim), jnp.float32).at[dst].add(e_emb))
    edge_agg = jnp.stack(edge_agg).astype(jnp.bfloat16)               # [L, N, d]

    # mean-pool matrix, graphs padded to a sublane-friendly row count
    Gp = max(8, ((num_graphs + 7) // 8) * 8)
    gids = jnp.arange(Gp, dtype=jnp.int32)
    onehot = (batch[None, :] == gids[:, None]).astype(jnp.float32)
    counts = jnp.clip(onehot.sum(axis=1, keepdims=True), 1.0, None)
    P = (onehot / counts).astype(jnp.bfloat16)                        # [Gp, N]

    # head weights as bf16 MXU operands; biases stay f32
    wd1 = params["wd1"].astype(jnp.bfloat16)
    wd2 = params["wd2"].astype(jnp.bfloat16)
    # lane-dense pred-head tail: pad to 128 output lanes (sliced after the call)
    wp1p = jnp.zeros((feat_dim, OUT_PAD), jnp.float32).at[:, :half].set(
        params["wp1"]).astype(jnp.bfloat16)
    bp1p = jnp.zeros((1, OUT_PAD), jnp.float32).at[:, :half].set(params["bp1"])
    wp2p = jnp.zeros((OUT_PAD, OUT_PAD), jnp.float32).at[:half, :2].set(
        params["wp2"]).astype(jnp.bfloat16)
    bp2p = jnp.zeros((1, OUT_PAD), jnp.float32).at[:, :2].set(params["bp2"])

    grid_spec = pltpu.PrefetchScalarGridSpec(
        num_scalar_prefetch=0,
        grid=(num_layer, NT),
        in_specs=[
            # resident across all grid steps (small after A-tiling)
            pl.BlockSpec((N, emb_dim), lambda l, t: (0, 0)),               # h0 (bf16)
            # streamed row tiles of the adjacency (pipeline behind the MXU)
            pl.BlockSpec((TM, N), lambda l, t: (t, 0)),                    # A[t] (bf16)
            # streamed per-layer / per-tile edge aggregation
            pl.BlockSpec((None, TM, emb_dim), lambda l, t: (l, t, 0)),     # edge_agg[l,t]
            # streamed per-layer MLP weights / BN affine (double-buffered)
            pl.BlockSpec((None, emb_dim, hid2), lambda l, t: (l, 0, 0)),   # w1[l]
            pl.BlockSpec((None, 1, hid2), lambda l, t: (l, 0, 0)),         # b1[l]
            pl.BlockSpec((None, hid2, emb_dim), lambda l, t: (l, 0, 0)),   # w2[l]
            pl.BlockSpec((None, 1, emb_dim), lambda l, t: (l, 0, 0)),      # b2[l]
            pl.BlockSpec((None, 1, emb_dim), lambda l, t: (l, 0, 0)),      # gamma[l]
            pl.BlockSpec((None, 1, emb_dim), lambda l, t: (l, 0, 0)),      # beta[l]
            # resident head parameters (small)
            pl.BlockSpec((Gp, N), lambda l, t: (0, 0)),                    # P (bf16)
            pl.BlockSpec((emb_dim, dec_hidden), lambda l, t: (0, 0)),      # wd1 (bf16)
            pl.BlockSpec((1, dec_hidden), lambda l, t: (0, 0)),            # bd1
            pl.BlockSpec((dec_hidden, feat_dim), lambda l, t: (0, 0)),     # wd2 (bf16)
            pl.BlockSpec((1, feat_dim), lambda l, t: (0, 0)),              # bd2
            pl.BlockSpec((feat_dim, OUT_PAD), lambda l, t: (0, 0)),        # wp1 (padded bf16)
            pl.BlockSpec((1, OUT_PAD), lambda l, t: (0, 0)),               # bp1 (padded)
            pl.BlockSpec((OUT_PAD, OUT_PAD), lambda l, t: (0, 0)),         # wp2 (padded bf16)
            pl.BlockSpec((1, OUT_PAD), lambda l, t: (0, 0)),               # bp2 (padded)
        ],
        out_specs=[
            pl.BlockSpec((Gp, feat_dim), lambda l, t: (0, 0)),             # hdec
            pl.BlockSpec((Gp, OUT_PAD), lambda l, t: (0, 0)),              # out (padded)
        ],
        scratch_shapes=[
            pltpu.VMEM((N, emb_dim), jnp.bfloat16),   # resident node features h
            pltpu.VMEM((N, emb_dim), jnp.float32),    # pre-BN layer output (two-phase BN)
        ],
    )

    hdec_p, out_p = pl.pallas_call(
        gae_kernel,
        out_shape=(jax.ShapeDtypeStruct((Gp, feat_dim), jnp.float32),
                   jax.ShapeDtypeStruct((Gp, OUT_PAD), jnp.float32)),
        grid_spec=grid_spec,
        compiler_params=pltpu.CompilerParams(
            # layer axis is a sequential dependency; row-tile axis carries the
            # BN-stat dependency, so both are "arbitrary".
            dimension_semantics=("arbitrary", "arbitrary"),
            vmem_limit_bytes=32 << 20),               # well under v7x's 64 MiB physical
    )(h0, A, edge_agg,
      params["w1"], params["b1"], params["w2"], params["b2"],
      params["gamma"], params["beta"],
      P,
      wd1, params["bd1"], wd2, params["bd2"],
      wp1p, bp1p, wp2p, bp2p)

    return hdec_p[:num_graphs], out_p[:num_graphs, :2]


# ----------------------------- pure-JAX reference ----------------------------

def reference_forward(params, x, edge_index, edge_attr, batch, num_graphs):
    N = x.shape[0]
    num_layer, emb_dim = params["w1"].shape[0], params["w1"].shape[1]
    h = params["x_emb1"][x[:, 0]] + params["x_emb2"][x[:, 1]]
    self_idx = jnp.arange(N, dtype=edge_index.dtype)
    src = jnp.concatenate([edge_index[0], self_idx])
    dst = jnp.concatenate([edge_index[1], self_idx])
    self_attr = jnp.concatenate(
        [jnp.full((N, 1), 4, edge_attr.dtype), jnp.zeros((N, 1), edge_attr.dtype)], axis=1)
    ea = jnp.concatenate([edge_attr, self_attr], axis=0)
    for l in range(num_layer):
        e_emb = params["edge_emb1"][l][ea[:, 0]] + params["edge_emb2"][l][ea[:, 1]]
        msg = h[src] + e_emb
        aggr = jnp.zeros((N, emb_dim), jnp.float32).at[dst].add(msg)
        hid = jnp.maximum(aggr @ params["w1"][l].astype(jnp.float32) + params["b1"][l], 0.0)
        h = hid @ params["w2"][l].astype(jnp.float32) + params["b2"][l]
        mean = h.mean(0, keepdims=True)
        var = ((h - mean) ** 2).mean(0, keepdims=True)
        h = (h - mean) / jnp.sqrt(var + BN_EPS) * params["gamma"][l] + params["beta"][l]
        if l < num_layer - 1:
            h = jnp.maximum(h, 0.0)
    onehot = (batch[None, :] == jnp.arange(num_graphs)[:, None]).astype(jnp.float32)
    pooled = (onehot @ h) / jnp.clip(onehot.sum(1, keepdims=True), 1.0, None)
    d1 = jnp.maximum(pooled @ params["wd1"] + params["bd1"], 0.0)
    hdec = d1 @ params["wd2"] + params["bd2"]
    p1 = _softplus(hdec @ params["wp1"] + params["bp1"])
    out = p1 @ params["wp2"] + params["bp2"]
    return hdec, out


if __name__ == "__main__":
    key = jax.random.PRNGKey(0)
    G = 8                       # graphs
    nodes_per_graph = 32
    N = G * nodes_per_graph     # 256 nodes -> 2 row tiles of 128
    E = 512                     # directed edges
    num_layer, emb_dim, feat_dim = 3, 128, 128
    # NOTE: for throughput, batch enough graphs that N reaches ~1024-2048; the
    # row-tiled aggregation keeps VMEM bounded as N grows.

    k = iter(jax.random.split(key, 16))
    params = make_params(next(k), num_layer, emb_dim, feat_dim)

    # synthetic molecular graph data
    atom = jax.random.randint(next(k), (N,), 0, NUM_ATOM_TYPE, jnp.int32)
    chir = jax.random.randint(next(k), (N,), 0, NUM_CHIRALITY_TAG, jnp.int32)
    x = jnp.stack([atom, chir], axis=1)                                # [N, 2]

    batch = jnp.repeat(jnp.arange(G, dtype=jnp.int32), nodes_per_graph)  # [N]
    g_of_edge = jax.random.randint(next(k), (E,), 0, G, jnp.int32)
    src = g_of_edge * nodes_per_graph + jax.random.randint(
        next(k), (E,), 0, nodes_per_graph, jnp.int32)
    dst = g_of_edge * nodes_per_graph + jax.random.randint(
        next(k), (E,), 0, nodes_per_graph, jnp.int32)
    edge_index = jnp.stack([src, dst], axis=0)                         # [2, E]
    bond = jax.random.randint(next(k), (E,), 0, 4, jnp.int32)
    bdir = jax.random.randint(next(k), (E,), 0, NUM_BOND_DIRECTION, jnp.int32)
    edge_attr = jnp.stack([bond, bdir], axis=1)                        # [E, 2]

    hdec, out = graph_autoencoder_forward(params, x, edge_index, edge_attr, batch, G)
    jax.block_until_ready((hdec, out))

    hdec_ref, out_ref = reference_forward(params, x, edge_index, edge_attr, batch, G)
    # bf16 MXU operands throughout the kernel (f32 accumulation) vs. f32 reference
    # -> tolerance loosened accordingly.
    assert jnp.allclose(hdec, hdec_ref, atol=5e-2, rtol=5e-2), "hdec mismatch"
    assert jnp.allclose(out, out_ref, atol=5e-2, rtol=5e-2), "out mismatch"

    print("KERNEL_OK")
</pallas_src>

<mosaic_0001>
module attributes {stable_mosaic.version = 11 : i64} {
  func.func @gae_kernel(%arg0: i32, %arg1: i32, %arg2: memref<256x128xbf16, #tpu.memory_space<vmem>>, %arg3: memref<128x256xbf16, #tpu.memory_space<vmem>>, %arg4: memref<1x128x128xbf16, #tpu.memory_space<vmem>>, %arg5: memref<1x128x256xbf16, #tpu.memory_space<vmem>>, %arg6: memref<1x1x256xf32, #tpu.memory_space<vmem>>, %arg7: memref<1x256x128xbf16, #tpu.memory_space<vmem>>, %arg8: memref<1x1x128xf32, #tpu.memory_space<vmem>>, %arg9: memref<1x1x128xf32, #tpu.memory_space<vmem>>, %arg10: memref<1x1x128xf32, #tpu.memory_space<vmem>>, %arg11: memref<8x256xbf16, #tpu.memory_space<vmem>>, %arg12: memref<128x128xbf16, #tpu.memory_space<vmem>>, %arg13: memref<1x128xf32, #tpu.memory_space<vmem>>, %arg14: memref<128x128xbf16, #tpu.memory_space<vmem>>, %arg15: memref<1x128xf32, #tpu.memory_space<vmem>>, %arg16: memref<128x128xbf16, #tpu.memory_space<vmem>>, %arg17: memref<1x128xf32, #tpu.memory_space<vmem>>, %arg18: memref<128x128xbf16, #tpu.memory_space<vmem>>, %arg19: memref<1x128xf32, #tpu.memory_space<vmem>>, %arg20: memref<8x128xf32, #tpu.memory_space<vmem>>, %arg21: memref<8x128xf32, #tpu.memory_space<vmem>>, %arg22: memref<256x128xbf16, #tpu.memory_space<vmem>>, %arg23: memref<256x128xf32, #tpu.memory_space<vmem>>) attributes {dimension_semantics = [#tpu.dimension_semantics<arbitrary>, #tpu.dimension_semantics<arbitrary>], iteration_bounds = array<i64: 3, 2>, scalar_prefetch = 0 : i64, scratch_operands = 2 : i64, tpu.core_type = #tpu.core_type<tc>, window_params = [{pipeline_mode = #tpu.pipeline_mode<synchronous>, transform_indices = @transform_0, window_bounds = array<i64: 256, 128>}, {transform_indices = @transform_1, window_bounds = array<i64: 128, 256>}, {transform_indices = @transform_2, window_bounds = array<i64: 1, 128, 128>}, {transform_indices = @transform_3, window_bounds = array<i64: 1, 128, 256>}, {transform_indices = @transform_4, window_bounds = array<i64: 1, 1, 256>}, {transform_indices = @transform_5, window_bounds = array<i64: 1, 256, 128>}, {transform_indices = @transform_6, window_bounds = array<i64: 1, 1, 128>}, {transform_indices = @transform_7, window_bounds = array<i64: 1, 1, 128>}, {transform_indices = @transform_8, window_bounds = array<i64: 1, 1, 128>}, {pipeline_mode = #tpu.pipeline_mode<synchronous>, transform_indices = @transform_9, window_bounds = array<i64: 8, 256>}, {pipeline_mode = #tpu.pipeline_mode<synchronous>, transform_indices = @transform_10, window_bounds = array<i64: 128, 128>}, {pipeline_mode = #tpu.pipeline_mode<synchronous>, transform_indices = @transform_11, window_bounds = array<i64: 1, 128>}, {pipeline_mode = #tpu.pipeline_mode<synchronous>, transform_indices = @transform_12, window_bounds = array<i64: 128, 128>}, {pipeline_mode = #tpu.pipeline_mode<synchronous>, transform_indices = @transform_13, window_bounds = array<i64: 1, 128>}, {pipeline_mode = #tpu.pipeline_mode<synchronous>, transform_indices = @transform_14, window_bounds = array<i64: 128, 128>}, {pipeline_mode = #tpu.pipeline_mode<synchronous>, transform_indices = @transform_15, window_bounds = array<i64: 1, 128>}, {pipeline_mode = #tpu.pipeline_mode<synchronous>, transform_indices = @transform_16, window_bounds = array<i64: 128, 128>}, {pipeline_mode = #tpu.pipeline_mode<synchronous>, transform_indices = @transform_17, window_bounds = array<i64: 1, 128>}, {pipeline_mode = #tpu.pipeline_mode<synchronous>, transform_indices = @transform_18, window_bounds = array<i64: 8, 128>}, {pipeline_mode = #tpu.pipeline_mode<synchronous>, transform_indices = @transform_19, window_bounds = array<i64: 8, 128>}]} {
    %c0_i32 = arith.constant 0 : i32
    %0 = arith.cmpi eq, %arg0, %c0_i32 : i32
    %c0_i32_0 = arith.constant 0 : i32
    %1 = arith.cmpi eq, %arg1, %c0_i32_0 : i32
    %2 = arith.andi %0, %1 : i1
    %3 = arith.extui %2 : i1 to i32
    %c0_i32_1 = arith.constant 0 : i32
    %4 = arith.cmpi ne, %3, %c0_i32_1 : i32
    scf.if %4 {
      %c0_25 = arith.constant 0 : index
      %c0_26 = arith.constant 0 : index
      %36 = vector.load %arg2[%c0_25, %c0_26] : memref<256x128xbf16, #tpu.memory_space<vmem>>, vector<256x128xbf16>
      %c0_27 = arith.constant 0 : index
      %c0_28 = arith.constant 0 : index
      %37 = vector.load %arg22[%c0_27, %c0_28] : memref<256x128xbf16, #tpu.memory_space<vmem>>, vector<256x128xbf16>
      tpu.vector_store %arg22[%c0_27, %c0_28], %36 {strides = array<i32>} : memref<256x128xbf16, #tpu.memory_space<vmem>>, vector<256x128xbf16>,
    } else {
    }
    %c0 = arith.constant 0 : index
    %c0_2 = arith.constant 0 : index
    %5 = vector.load %arg3[%c0, %c0_2] : memref<128x256xbf16, #tpu.memory_space<vmem>>, vector<128x256xbf16>
    %c0_3 = arith.constant 0 : index
    %c0_4 = arith.constant 0 : index
    %6 = vector.load %arg22[%c0_3, %c0_4] : memref<256x128xbf16, #tpu.memory_space<vmem>>, vector<256x128xbf16>
    %cst = arith.constant dense<0.000000e+00> : vector<128x128xf32>
    %7 = tpu.matmul %5, %6, %cst {dimension_numbers = #tpu.dot_dimension_numbers<[1], [0], [0], [1], [0, 0, 1, 1], [], []>} : vector<128x256xbf16>, vector<256x128xbf16>, vector<128x128xf32> -> vector<128x128xf32>
    %8 = arith.truncf %7 : vector<128x128xf32> to vector<128x128xbf16>
    %c0_5 = arith.constant 0 : index
    %c0_6 = arith.constant 0 : index
    %c0_7 = arith.constant 0 : index
    %9 = vector.load %arg4[%c0_5, %c0_6, %c0_7] : memref<1x128x128xbf16, #tpu.memory_space<vmem>>, vector<1x128x128xbf16>
    %10 = vector.shape_cast %9 : vector<1x128x128xbf16> to vector<128x128xbf16>
    %11 = arith.addf %8, %10 : vector<128x128xbf16>
    %c0_8 = arith.constant 0 : index
    %c0_9 = arith.constant 0 : index
    %c0_10 = arith.constant 0 : index
    %12 = vector.load %arg5[%c0_8, %c0_9, %c0_10] : memref<1x128x256xbf16, #tpu.memory_space<vmem>>, vector<1x128x256xbf16>
    %13 = vector.shape_cast %12 : vector<1x128x256xbf16> to vector<128x256xbf16>
    %cst_11 = arith.constant dense<0.000000e+00> : vector<128x256xf32>
    %14 = tpu.matmul %11, %13, %cst_11 {dimension_numbers = #tpu.dot_dimension_numbers<[1], [0], [0], [1], [0, 0, 1, 1], [], []>} : vector<128x128xbf16>, vector<128x256xbf16>, vector<128x256xf32> -> vector<128x256xf32>
    %c0_12 = arith.constant 0 : index
    %c0_13 = arith.constant 0 : index
    %c0_14 = arith.constant 0 : index
    %15 = vector.load %arg6[%c0_12, %c0_13, %c0_14] : memref<1x1x256xf32, #tpu.memory_space<vmem>>, vector<1x1x256xf32>
    %16 = vector.shape_cast %15 : vector<1x1x256xf32> to vector<1x256xf32>
    %17 = vector.broadcast %16 : vector<1x256xf32> to vector<128x256xf32>
    %18 = arith.addf %14, %17 : vector<128x256xf32>
    %cst_15 = arith.constant 0.000000e+00 : f32
    %19 = vector.broadcast %cst_15 : f32 to vector<128x256xf32>
    %20 = arith.maximumf %18, %19 : vector<128x256xf32>
    %21 = arith.truncf %20 : vector<128x256xf32> to vector<128x256xbf16>
    %c0_16 = arith.constant 0 : index
    %c0_17 = arith.constant 0 : index
    %c0_18 = arith.constant 0 : index
    %22 = vector.load %arg7[%c0_16, %c0_17, %c0_18] : memref<1x256x128xbf16, #tpu.memory_space<vmem>>, vector<1x256x128xbf16>
    %23 = vector.shape_cast %22 : vector<1x256x128xbf16> to vector<256x128xbf16>
    %cst_19 = arith.constant dense<0.000000e+00> : vector<128x128xf32>
    %24 = tpu.matmul %21, %23, %cst_19 {dimension_numbers = #tpu.dot_dimension_numbers<[1], [0], [0], [1], [0, 0, 1, 1], [], []>} : vector<128x256xbf16>, vector<256x128xbf16>, vector<128x128xf32> -> vector<128x128xf32>
    %c0_20 = arith.constant 0 : index
    %c0_21 = arith.constant 0 : index
    %c0_22 = arith.constant 0 : index
    %25 = vector.load %arg8[%c0_20, %c0_21, %c0_22] : memref<1x1x128xf32, #tpu.memory_space<vmem>>, vector<1x1x128xf32>
    %26 = vector.shape_cast %25 : vector<1x1x128xf32> to vector<1x128xf32>
    %27 = vector.broadcast %26 : vector<1x128xf32> to vector<128x128xf32>
    %28 = arith.addf %24, %27 : vector<128x128xf32>
    %c128_i32 = arith.constant 128 : i32
    %29 = arith.muli %arg1, %c128_i32 : i32
    %30 = tpu.assume_multiple %29, 128 : i32
    %31 = arith.index_cast %30 : i32 to index
    %c0_23 = arith.constant 0 : index
    %32 = vector.load %arg23[%31, %c0_23] : memref<256x128xf32, #tpu.memory_space<vmem>>, vector<128x128xf32>
    tpu.vector_store %arg23[%31, %c0_23], %28 {strides = array<i32>} : memref<256x128xf32, #tpu.memory_space<vmem>>, vector<128x128xf32>,
    %c1_i32 = arith.constant 1 : i32
    %33 = arith.cmpi eq, %arg1, %c1_i32 : i32
    %34 = arith.extui %33 : i1 to i32
    %c0_i32_24 = arith.constant 0 : i32
    %35 = arith.cmpi ne, %34, %c0_i32_24 : i32
    scf.if %35 {
      %c0_25 = arith.constant 0 : index
      %c0_26 = arith.constant 0 : index
      %36 = vector.load %arg23[%c0_25, %c0_26] : memref<256x128xf32, #tpu.memory_space<vmem>>, vector<256x128xf32>
      %cst_27 = arith.constant dense<0.000000e+00> : vector<128xf32>
      %37 = vector.multi_reduction <add>, %36, %cst_27 [0] : vector<256x128xf32> to vector<128xf32>
      %38 = vector.shape_cast %37 : vector<128xf32> to vector<1x128xf32>
      %cst_28 = arith.constant 3.906250e-03 : f32
      %39 = vector.broadcast %cst_28 : f32 to vector<1x128xf32>
      %40 = arith.mulf %38, %39 : vector<1x128xf32>
      %41 = vector.broadcast %40 : vector<1x128xf32> to vector<256x128xf32>
      %42 = arith.subf %36, %41 : vector<256x128xf32>
      %43 = arith.mulf %42, %42 : vector<256x128xf32>
      %cst_29 = arith.constant dense<0.000000e+00> : vector<128xf32>
      %44 = vector.multi_reduction <add>, %43, %cst_29 [0] : vector<256x128xf32> to vector<128xf32>
      %45 = vector.shape_cast %44 : vector<128xf32> to vector<1x128xf32>
      %cst_30 = arith.constant 3.906250e-03 : f32
      %46 = vector.broadcast %cst_30 : f32 to vector<1x128xf32>
      %47 = arith.mulf %45, %46 : vector<1x128xf32>
      %c0_31 = arith.constant 0 : index
      %c0_32 = arith.constant 0 : index
      %c0_33 = arith.constant 0 : index
      %48 = vector.load %arg9[%c0_31, %c0_32, %c0_33] : memref<1x1x128xf32, #tpu.memory_space<vmem>>, vector<1x1x128xf32>
      %49 = vector.shape_cast %48 : vector<1x1x128xf32> to vector<1x128xf32>
      %cst_34 = arith.constant 9.99999974E-6 : f32
      %50 = vector.broadcast %cst_34 : f32 to vector<1x128xf32>
      %51 = arith.addf %47, %50 : vector<1x128xf32>
      %52 = math.rsqrt %51 : vector<1x128xf32>
      %53 = arith.mulf %49, %52 : vector<1x128xf32>
      %54 = vector.broadcast %53 : vector<1x128xf32> to vector<256x128xf32>
      %55 = arith.mulf %42, %54 : vector<256x128xf32>
      %c0_35 = arith.constant 0 : index
      %c0_36 = arith.constant 0 : index
      %c0_37 = arith.constant 0 : index
      %56 = vector.load %arg10[%c0_35, %c0_36, %c0_37] : memref<1x1x128xf32, #tpu.memory_space<vmem>>, vector<1x1x128xf32>
      %57 = vector.shape_cast %56 : vector<1x1x128xf32> to vector<1x128xf32>
      %58 = vector.broadcast %57 : vector<1x128xf32> to vector<256x128xf32>
      %59 = arith.addf %55, %58 : vector<256x128xf32>
      %c2_i32 = arith.constant 2 : i32
      %60 = arith.cmpi eq, %arg0, %c2_i32 : i32
      %true = arith.constant true
      %61 = arith.xori %60, %true : i1
      %62 = arith.extui %61 : i1 to i32
      %c0_i32_38 = arith.constant 0 : i32
      %63 = arith.cmpi ne, %62, %c0_i32_38 : i32
      scf.if %63 {
        %cst_40 = arith.constant 0.000000e+00 : f32
        %66 = vector.broadcast %cst_40 : f32 to vector<256x128xf32>
        %67 = arith.maximumf %59, %66 : vector<256x128xf32>
        %68 = arith.truncf %67 : vector<256x128xf32> to vector<256x128xbf16>
        %c0_41 = arith.constant 0 : index
        %c0_42 = arith.constant 0 : index
        %69 = vector.load %arg22[%c0_41, %c0_42] : memref<256x128xbf16, #tpu.memory_space<vmem>>, vector<256x128xbf16>
        tpu.vector_store %arg22[%c0_41, %c0_42], %68 {strides = array<i32>} : memref<256x128xbf16, #tpu.memory_space<vmem>>, vector<256x128xbf16>,
      } else {
      }
      %64 = arith.extui %60 : i1 to i32
      %c0_i32_39 = arith.constant 0 : i32
      %65 = arith.cmpi ne, %64, %c0_i32_39 : i32
      scf.if %65 {
        %c0_40 = arith.constant 0 : index
        %c0_41 = arith.constant 0 : index
        %66 = vector.load %arg11[%c0_40, %c0_41] : memref<8x256xbf16, #tpu.memory_space<vmem>>, vector<8x256xbf16>
        %67 = arith.truncf %59 : vector<256x128xf32> to vector<256x128xbf16>
        %cst_42 = arith.constant dense<0.000000e+00> : vector<8x128xf32>
        %68 = tpu.matmul %66, %67, %cst_42 {dimension_numbers = #tpu.dot_dimension_numbers<[1], [0], [0], [1], [0, 0, 1, 1], [], []>} : vector<8x256xbf16>, vector<256x128xbf16>, vector<8x128xf32> -> vector<8x128xf32>
        %69 = arith.truncf %68 : vector<8x128xf32> to vector<8x128xbf16>
        %c0_43 = arith.constant 0 : index
        %c0_44 = arith.constant 0 : index
        %70 = vector.load %arg12[%c0_43, %c0_44] : memref<128x128xbf16, #tpu.memory_space<vmem>>, vector<128x128xbf16>
        %cst_45 = arith.constant dense<0.000000e+00> : vector<8x128xf32>
        %71 = tpu.matmul %69, %70, %cst_45 {dimension_numbers = #tpu.dot_dimension_numbers<[1], [0], [0], [1], [0, 0, 1, 1], [], []>} : vector<8x128xbf16>, vector<128x128xbf16>, vector<8x128xf32> -> vector<8x128xf32>
        %c0_46 = arith.constant 0 : index
        %c0_47 = arith.constant 0 : index
        %72 = vector.load %arg13[%c0_46, %c0_47] : memref<1x128xf32, #tpu.memory_space<vmem>>, vector<1x128xf32>
        %73 = vector.broadcast %72 : vector<1x128xf32> to vector<8x128xf32>
        %74 = arith.addf %71, %73 : vector<8x128xf32>
        %cst_48 = arith.constant 0.000000e+00 : f32
        %75 = vector.broadcast %cst_48 : f32 to vector<8x128xf32>
        %76 = arith.maximumf %74, %75 : vector<8x128xf32>
        %77 = arith.truncf %76 : vector<8x128xf32> to vector<8x128xbf16>
        %c0_49 = arith.constant 0 : index
        %c0_50 = arith.constant 0 : index
        %78 = vector.load %arg14[%c0_49, %c0_50] : memref<128x128xbf16, #tpu.memory_space<vmem>>, vector<128x128xbf16>
        %cst_51 = arith.constant dense<0.000000e+00> : vector<8x128xf32>
        %79 = tpu.matmul %77, %78, %cst_51 {dimension_numbers = #tpu.dot_dimension_numbers<[1], [0], [0], [1], [0, 0, 1, 1], [], []>} : vector<8x128xbf16>, vector<128x128xbf16>, vector<8x128xf32> -> vector<8x128xf32>
        %c0_52 = arith.constant 0 : index
        %c0_53 = arith.constant 0 : index
        %80 = vector.load %arg15[%c0_52, %c0_53] : memref<1x128xf32, #tpu.memory_space<vmem>>, vector<1x128xf32>
        %81 = vector.broadcast %80 : vector<1x128xf32> to vector<8x128xf32>
        %82 = arith.addf %79, %81 : vector<8x128xf32>
        %83 = arith.truncf %82 : vector<8x128xf32> to vector<8x128xbf16>
        %c0_54 = arith.constant 0 : index
        %c0_55 = arith.constant 0 : index
        %84 = vector.load %arg16[%c0_54, %c0_55] : memref<128x128xbf16, #tpu.memory_space<vmem>>, vector<128x128xbf16>
        %cst_56 = arith.constant dense<0.000000e+00> : vector<8x128xf32>
        %85 = tpu.matmul %83, %84, %cst_56 {dimension_numbers = #tpu.dot_dimension_numbers<[1], [0], [0], [1], [0, 0, 1, 1], [], []>} : vector<8x128xbf16>, vector<128x128xbf16>, vector<8x128xf32> -> vector<8x128xf32>
        %c0_57 = arith.constant 0 : index
        %c0_58 = arith.constant 0 : index
        %86 = vector.load %arg17[%c0_57, %c0_58] : memref<1x128xf32, #tpu.memory_space<vmem>>, vector<1x128xf32>
        %87 = vector.broadcast %86 : vector<1x128xf32> to vector<8x128xf32>
        %88 = arith.addf %85, %87 : vector<8x128xf32>
        %cst_59 = arith.constant 0.000000e+00 : f32
        %89 = vector.broadcast %cst_59 : f32 to vector<8x128xf32>
        %90 = arith.maximumf %88, %89 : vector<8x128xf32>
        %91 = math.absf %88 : vector<8x128xf32>
        %cst_60 = arith.constant 0.000000e+00 : f32
        %92 = vector.broadcast %cst_60 : f32 to vector<8x128xf32>
        %93 = arith.subf %92, %91 : vector<8x128xf32>
        %94 = math.exp %93 : vector<8x128xf32>
        %cst_61 = arith.constant 1.000000e+00 : f32
        %95 = vector.broadcast %cst_61 : f32 to vector<8x128xf32>
        %96 = arith.addf %95, %94 : vector<8x128xf32>
        %97 = math.log %96 : vector<8x128xf32>
        %98 = arith.addf %90, %97 : vector<8x128xf32>
        %99 = arith.truncf %98 : vector<8x128xf32> to vector<8x128xbf16>
        %c0_62 = arith.constant 0 : index
        %c0_63 = arith.constant 0 : index
        %100 = vector.load %arg18[%c0_62, %c0_63] : memref<128x128xbf16, #tpu.memory_space<vmem>>, vector<128x128xbf16>
        %cst_64 = arith.constant dense<0.000000e+00> : vector<8x128xf32>
        %101 = tpu.matmul %99, %100, %cst_64 {dimension_numbers = #tpu.dot_dimension_numbers<[1], [0], [0], [1], [0, 0, 1, 1], [], []>} : vector<8x128xbf16>, vector<128x128xbf16>, vector<8x128xf32> -> vector<8x128xf32>
        %c0_65 = arith.constant 0 : index
        %c0_66 = arith.constant 0 : index
        %102 = vector.load %arg19[%c0_65, %c0_66] : memref<1x128xf32, #tpu.memory_space<vmem>>, vector<1x128xf32>
        %103 = vector.broadcast %102 : vector<1x128xf32> to vector<8x128xf32>
        %104 = arith.addf %101, %103 : vector<8x128xf32>
        %c0_67 = arith.constant 0 : index
        %c0_68 = arith.constant 0 : index
        %105 = vector.load %arg20[%c0_67, %c0_68] : memref<8x128xf32, #tpu.memory_space<vmem>>, vector<8x128xf32>
        tpu.vector_store %arg20[%c0_67, %c0_68], %82 {strides = array<i32>} : memref<8x128xf32, #tpu.memory_space<vmem>>, vector<8x128xf32>,
        %c0_69 = arith.constant 0 : index
        %c0_70 = arith.constant 0 : index
        %106 = vector.load %arg21[%c0_69, %c0_70] : memref<8x128xf32, #tpu.memory_space<vmem>>, vector<8x128xf32>
        tpu.vector_store %arg21[%c0_69, %c0_70], %104 {strides = array<i32>} : memref<8x128xf32, #tpu.memory_space<vmem>>, vector<8x128xf32>,
      } else {
      }
    } else {
    }
    return
  }
  func.func @transform_0(%arg0: i32, %arg1: i32) -> (i32, i32) {
    %c0_i32 = arith.constant 0 : i32
    %c0_i32_0 = arith.constant 0 : i32
    %c0_i32_1 = arith.constant 0 : i32
    return %c0_i32, %c0_i32_0 : i32, i32
  }
  func.func @transform_1(%arg0: i32, %arg1: i32) -> (i32, i32) {
    %c0_i32 = arith.constant 0 : i32
    %c0_i32_0 = arith.constant 0 : i32
    return %arg1, %c0_i32 : i32, i32
  }
  func.func @transform_2(%arg0: i32, %arg1: i32) -> (i32, i32, i32) {
    %c0_i32 = arith.constant 0 : i32
    %c0_i32_0 = arith.constant 0 : i32
    return %arg0, %arg1, %c0_i32 : i32, i32, i32
  }
  func.func @transform_3(%arg0: i32, %arg1: i32) -> (i32, i32, i32) {
    %c0_i32 = arith.constant 0 : i32
    %c0_i32_0 = arith.constant 0 : i32
    %c0_i32_1 = arith.constant 0 : i32
    return %arg0, %c0_i32, %c0_i32_0 : i32, i32, i32
  }
  func.func @transform_4(%arg0: i32, %arg1: i32) -> (i32, i32, i32) {
    %c0_i32 = arith.constant 0 : i32
    %c0_i32_0 = arith.constant 0 : i32
    %c0_i32_1 = arith.constant 0 : i32
    return %arg0, %c0_i32, %c0_i32_0 : i32, i32, i32
  }
  func.func @transform_5(%arg0: i32, %arg1: i32) -> (i32, i32, i32) {
    %c0_i32 = arith.constant 0 : i32
    %c0_i32_0 = arith.constant 0 : i32
    %c0_i32_1 = arith.constant 0 : i32
    return %arg0, %c0_i32, %c0_i32_0 : i32, i32, i32
  }
  func.func @transform_6(%arg0: i32, %arg1: i32) -> (i32, i32, i32) {
    %c0_i32 = arith.constant 0 : i32
    %c0_i32_0 = arith.constant 0 : i32
    %c0_i32_1 = arith.constant 0 : i32
    return %arg0, %c0_i32, %c0_i32_0 : i32, i32, i32
  }
  func.func @transform_7(%arg0: i32, %arg1: i32) -> (i32, i32, i32) {
    %c0_i32 = arith.constant 0 : i32
    %c0_i32_0 = arith.constant 0 : i32
    %c0_i32_1 = arith.constant 0 : i32
    return %arg0, %c0_i32, %c0_i32_0 : i32, i32, i32
  }
  func.func @transform_8(%arg0: i32, %arg1: i32) -> (i32, i32, i32) {
    %c0_i32 = arith.constant 0 : i32
    %c0_i32_0 = arith.constant 0 : i32
    %c0_i32_1 = arith.constant 0 : i32
    return %arg0, %c0_i32, %c0_i32_0 : i32, i32, i32
  }
  func.func @transform_9(%arg0: i32, %arg1: i32) -> (i32, i32) {
    %c0_i32 = arith.constant 0 : i32
    %c0_i32_0 = arith.constant 0 : i32
    %c0_i32_1 = arith.constant 0 : i32
    return %c0_i32, %c0_i32_0 : i32, i32
  }
  func.func @transform_10(%arg0: i32, %arg1: i32) -> (i32, i32) {
    %c0_i32 = arith.constant 0 : i32
    %c0_i32_0 = arith.constant 0 : i32
    %c0_i32_1 = arith.constant 0 : i32
    return %c0_i32, %c0_i32_0 : i32, i32
  }
  func.func @transform_11(%arg0: i32, %arg1: i32) -> (i32, i32) {
    %c0_i32 = arith.constant 0 : i32
    %c0_i32_0 = arith.constant 0 : i32
    %c0_i32_1 = arith.constant 0 : i32
    return %c0_i32, %c0_i32_0 : i32, i32
  }
  func.func @transform_12(%arg0: i32, %arg1: i32) -> (i32, i32) {
    %c0_i32 = arith.constant 0 : i32
    %c0_i32_0 = arith.constant 0 : i32
    %c0_i32_1 = arith.constant 0 : i32
    return %c0_i32, %c0_i32_0 : i32, i32
  }
  func.func @transform_13(%arg0: i32, %arg1: i32) -> (i32, i32) {
    %c0_i32 = arith.constant 0 : i32
    %c0_i32_0 = arith.constant 0 : i32
    %c0_i32_1 = arith.constant 0 : i32
    return %c0_i32, %c0_i32_0 : i32, i32
  }
  func.func @transform_14(%arg0: i32, %arg1: i32) -> (i32, i32) {
    %c0_i32 = arith.constant 0 : i32
    %c0_i32_0 = arith.constant 0 : i32
    %c0_i32_1 = arith.constant 0 : i32
    return %c0_i32, %c0_i32_0 : i32, i32
  }
  func.func @transform_15(%arg0: i32, %arg1: i32) -> (i32, i32) {
    %c0_i32 = arith.constant 0 : i32
    %c0_i32_0 = arith.constant 0 : i32
    %c0_i32_1 = arith.constant 0 : i32
    return %c0_i32, %c0_i32_0 : i32, i32
  }
  func.func @transform_16(%arg0: i32, %arg1: i32) -> (i32, i32) {
    %c0_i32 = arith.constant 0 : i32
    %c0_i32_0 = arith.constant 0 : i32
    %c0_i32_1 = arith.constant 0 : i32
    return %c0_i32, %c0_i32_0 : i32, i32
  }
  func.func @transform_17(%arg0: i32, %arg1: i32) -> (i32, i32) {
    %c0_i32 = arith.constant 0 : i32
    %c0_i32_0 = arith.constant 0 : i32
    %c0_i32_1 = arith.constant 0 : i32
    return %c0_i32, %c0_i32_0 : i32, i32
  }
  func.func @transform_18(%arg0: i32, %arg1: i32) -> (i32, i32) {
    %c0_i32 = arith.constant 0 : i32
    %c0_i32_0 = arith.constant 0 : i32
    %c0_i32_1 = arith.constant 0 : i32
    return %c0_i32, %c0_i32_0 : i32, i32
  }
  func.func @transform_19(%arg0: i32, %arg1: i32) -> (i32, i32) {
    %c0_i32 = arith.constant 0 : i32
    %c0_i32_0 = arith.constant 0 : i32
    %c0_i32_1 = arith.constant 0 : i32
    return %c0_i32, %c0_i32_0 : i32, i32
  }
}

</mosaic_0001>

<bundles_post_ra>
// kernel: tpu_custom_call.1
= control target key start
LH: loop header
LB: loop body
LE: loop exit
PB: predicated region body
PF: predicated region fallthrough
CT: control target
= control target key end

     0   :  { %s5573_s0 = inlined_call_operand.hbm [shape: bf16[256,128], index: 0, kind: input, shape index: {}]   ;;  %s5574_s1 = inlined_call_operand.hbm [shape: bf16[256,256], index: 1, kind: input, shape index: {}]   ;;  %s5575_s2 = inlined_call_operand.hbm [shape: bf16[3,256,128], index: 2, kind: input, shape index: {}]   ;;  %s5576_s3 = inlined_call_operand.hbm [shape: bf16[3,128,256], index: 3, kind: input, shape index: {}]   ;;  %s5577_s4 = inlined_call_operand.vmem [shape: f32[3,1,256], index: 4, kind: input, shape index: {}]   ;;  %s5578_s5 = inlined_call_operand.hbm [shape: bf16[3,256,128], index: 5, kind: input, shape index: {}]   ;;  %s5579_s6 = inlined_call_operand.vmem [shape: f32[3,1,128], index: 6, kind: input, shape index: {}]   ;;  %s5580_s7 = inlined_call_operand.vmem [shape: f32[3,1,128], index: 7, kind: input, shape index: {}]   ;;  %s5581_s8 = inlined_call_operand.vmem [shape: f32[3,1,128], index: 8, kind: input, shape index: {}]   ;;  %s5582_s9 = inlined_call_operand.vmem [shape: bf16[8,256], index: 9, kind: input, shape index: {}]   ;;  %s5583_s10 = inlined_call_operand.hbm [shape: bf16[128,128], index: 10, kind: input, shape index: {}]   ;;  %s5584_s11 = inlined_call_operand.vmem [shape: f32[1,128], index: 11, kind: input, shape index: {}]   ;;  %s5585_s12 = inlined_call_operand.hbm [shape: bf16[128,128], index: 12, kind: input, shape index: {}]   ;;  %s5586_s13 = inlined_call_operand.vmem [shape: f32[1,128], index: 13, kind: input, shape index: {}]   ;;  %s5587_s14 = inlined_call_operand.hbm [shape: bf16[128,128], index: 14, kind: input, shape index: {}]   ;;  %s5588_s15 = inlined_call_operand.vmem [shape: f32[1,128], index: 15, kind: input, shape index: {}]   ;;  %s5589_s16 = inlined_call_operand.hbm [shape: bf16[128,128], index: 16, kind: input, shape index: {}]   ;;  %s5590_s17 = inlined_call_operand.vmem [shape: f32[1,128], index: 17, kind: input, shape index: {}]   ;;  %s5591_s18 = inlined_call_operand.hbm [shape: f32[8,128], index: 18, kind: output, shape index: {0}]   ;;  %s5592_s19 = inlined_call_operand.hbm [shape: f32[8,128], index: 19, kind: output, shape index: {1}]  }
   0x1   :  { %5635 = sst [smem:[#allocation45_spill]] %s5573_s0 }
   0x2   :  { %5636 = sst [smem:[#allocation46_spill]] %s5574_s1 }
   0x3   :  { %5637 = sst [smem:[#allocation47_spill]] %s5575_s2 }
   0x4   :  { %5638 = sst [smem:[#allocation48_spill]] %s5576_s3 }
   0x5   :  { %5639 = sst [smem:[#allocation49_spill]] %s5577_s4 }
   0x6   :  { %5640 = sst [smem:[#allocation50_spill]] %s5578_s5 }
   0x7   :  { %5641 = sst [smem:[#allocation51_spill]] %s5579_s6 }
   0x8   :  { %5642 = sst [smem:[#allocation52_spill]] %s5580_s7 }
   0x9   :  { %5643 = sst [smem:[#allocation53_spill]] %s5581_s8 }
   0xa   :  { %5644 = sst [smem:[#allocation54_spill]] %s5582_s9 }
   0xb   :  { %5645 = sst [smem:[#allocation55_spill]] %s5583_s10 }
   0xc   :  { %5646 = sst [smem:[#allocation56_spill]] %s5584_s11 }
   0xd   :  { %5647 = sst [smem:[#allocation57_spill]] %s5585_s12 }
   0xe   :  { %5648 = sst [smem:[#allocation58_spill]] %s5586_s13 }
   0xf   :  { %5649 = sst [smem:[#allocation59_spill]] %s5587_s14 }
  0x10   :  { %5650 = sst [smem:[#allocation60_spill]] %s5588_s15 }
  0x11   :  { %5651 = sst [smem:[#allocation61_spill]] %s5590_s17 }
  0x12   :  { %5652 = sst [smem:[#allocation62_spill]] %s5591_s18 }
  0x13   :  { %5653 = sst [smem:[#allocation63_spill]] %s5592_s19 }
  0x14   :  { %25 = vsyncpa [#allocation5], 0 }
  0x15   :  { %26 = vsyncpa [#allocation8], 0 }
  0x16   :  { %28 = vsyncpa [#allocation8 + $0x1], 0 }
  0x17   :  { %29 = vsyncpa [#allocation11], 0 }
  0x18   :  { %31 = vsyncpa [#allocation11 + $0x1], 0 }
  0x19   :  { %32 = vsyncpa [#allocation14], 0 }
  0x1a   :  { %33 = vsyncpa [#allocation17], 0 }
  0x1b   :  { %34 = vsyncpa [#allocation6], 0 }
  0x1c   :  { %35 = vsyncpa [#allocation21], 0  ;;  %s4282_s0 = smov 0   ;;  %s4284_s30 = smov 0  }
  0x1d   :  { %s4286_s20 = smov 0   ;;  %s4288_s21 = smov 0  }
  0x1e   :  { %s4290_s1 = smov 0   ;;  %s4292_s22 = smov 0  }
  0x1f   :  { %s4294_s2 = smov 0   ;;  %s4296_s23 = smov 0  }
  0x20   :  { %s4298_s24 = smov 0   ;;  %s4300_s25 = smov 0  }
  0x21   :  { %s4302_s3 = smov 0   ;;  %s4304_s26 = smov 0  }
  0x22   :  { %s4306_s27 = smov 0   ;;  %s4308_s28 = smov 0  }
  0x23 LB: > { %5654 = sst [smem:[#allocation30_spill]] %s4114_s30  ;;  %s4353_s29 = sadd.s32 4294967295, %s4162_s28   ;;  %s4162_s28 = sphi %s4308_s28, %s41_s28   ;;  %s4158_s27 = sphi %s4306_s27, %s5766_s27   ;;  %s4154_s26 = sphi %s4304_s26, %s5765_s26   ;;  %s4150_s3 = sphi %s4302_s3, %s5764_s3   ;;  %s4146_s25 = sphi %s4300_s25, %s5763_s25   ;;  %s4142_s24 = sphi %s4298_s24, %s5756_s24   ;;  %s4138_s23 = sphi %s4296_s23, %s5755_s23   ;;  %s4134_s2 = sphi %s4294_s2, %s5754_s2   ;;  %s4130_s22 = sphi %s4292_s22, %s5762_s22   ;;  %s4126_s1 = sphi %s4290_s1, %s5761_s1   ;;  %s4122_s21 = sphi %s4288_s21, %s5753_s21   ;;  %s4118_s20 = sphi %s4286_s20, %s5760_s20   ;;  %s4114_s30 = sphi %s4284_s30, %s5751_s30   ;;  %s4110_s0 = sphi %s4282_s0, %s5750_s0  }
  0x24   : > { %5655 = sst [smem:[#allocation31_spill]] %s4118_s20  ;;  %p2934_p0 = scmp.ge.s32.totalorder %s4162_s28, 1 }
  0x25   : > { %5656 = sst [smem:[#allocation32_spill]] %s4122_s21  ;;  %p5600_p1 = scmp.eq.s32.totalorder %s4353_s29, 0 }
  0x26   : > { %5657 = sst [smem:[#allocation33_spill]] %s4126_s1  ;;  %p520_p2 = scmp.lt.s32.totalorder %s4162_s28, 7 }
  0x27   : > { %5658 = sst [smem:[#allocation34_spill]] %s4138_s23  ;;  %s4164_s18 = smov [#allocation13]  }
  0x28   : > { %5659 = sst [smem:[#allocation35_spill]] %s4142_s24  ;;  %p4358_p3 = pnand %p2934_p0, %p520_p2 }
  0x29   : > { %5660 = sst [smem:[#allocation36_spill]] %s4146_s25  ;;  %s548_s17 = sshll.u32 %s4164_s18, 4  ;;  %s549_s17 = int_to_ptr.vmem [resolvable:$true] %s548_s17 }
  0x2a   : > { %5661 = sst [smem:[#allocation37_spill]] %s4150_s3  ;;  %p3410_p4 = pneg %p4358_p3 }
  0x2b   : > { %s5662_s19 = scalar_select %p4358_p3, 1, 0 }
  0x2c   : > { %s4165_s15 = smov [#allocation16]   ;;  %p4366_p5 = pnand %p3410_p4, %p5600_p1 }
  0x2d   : > { %5663 = sst [smem:[#allocation38_spill]] %s5662_s19  ;;  %s580_s13 = sshll.u32 %s4165_s15, 4  ;;  %s4370_s13 = int_to_ptr.vmem [resolvable:$true] %s580_s13 }
  0x2e   : > { %s5664_s11 = scalar_select %p4366_p5, 1, 0 }
  0x2f   : > { %s5665_s10 = sld [smem:[#allocation55_spill]]  ;;  %p4380_p7 = pneg %p4366_p5 }
  0x31   : > { %s5666_s18 = scalar_select %p4380_p7, 1, 0 }
  0x35   : > { %s3708_s7 = scalar_lea.hbm %s5665_s10, 1024 }
  0x36   : > { %p3709_p6 = scmp.ne.s32.totalorder %s5665_s10, %s3708_s7  ;;  %p3715_p10 = scmp.lt.u32.totalorder %s3708_s7, %s5665_s10 }
  0x38   : > { %p3711_p8 = pnand %p4380_p7, %p3709_p6 }
  0x3a   : > { %p3712_p9 = pneg %p3711_p8 }
  0x3c   : > { %p3717_p11 = pnand %p3715_p10, %p3712_p9 }
  0x3e   : > { %3720 = shalt.err (!%p3717_p11)
}
  0x3f   : > { %s3721_s8 = scalar_lea.vmem %s549_s17, 1024  ;;  %p3729_p2 = scmp.lt.s32.totalorder %s549_s17, %s549_s17 }
  0x40   : > { %p3722_p12 = scmp.ne.s32.totalorder %s549_s17, %s3721_s8  ;;  %p3730_p4 = scmp.lt.s32.totalorder %s3721_s8, %s3721_s8 }
  0x42   : > { %p3724_p13 = pnand %p3722_p12, %p4380_p7  ;;  %p3731_p1 = por %p3730_p4, %p3729_p2 }
  0x44   : > { %p3725_p0 = pneg %p3724_p13 }
  0x46   : > { %p3732_p3 = pnand %p3731_p1, %p3725_p0 }
  0x48   : > { %3735 = shalt.err (!%p3732_p3)
}
  0x49   : > { %s5605_s4 = smov 64   ;;  %s5607_s6 = smov 4  }
  0x4a   : > { %3416 = dma.hbm_to_vmem [thread:$0]  (!%p4366_p5), %s5665_s10, 1024, %s549_s17, [#allocation14], %s5605_s4, %s5605_s4, %s5607_s6  }
  0x4b   : > { %s5667_s14 = sld [smem:[#allocation59_spill]] }
  0x51   : > { %s3736_s3 = scalar_lea.hbm %s5667_s14, 1024 }
  0x52   : > { %p3737_p1 = scmp.ne.s32.totalorder %s5667_s14, %s3736_s3  ;;  %p3743_p8 = scmp.lt.u32.totalorder %s3736_s3, %s5667_s14 }
  0x54   : > { %p3739_p3 = pnand %p3737_p1, %p4380_p7 }
  0x56   : > { %p3740_p6 = pneg %p3739_p3 }
  0x58   : > { %p3745_p9 = pnand %p3743_p8, %p3740_p6 }
  0x5a   : > { %3748 = shalt.err (!%p3745_p9)
}
  0x5b   : > { %s3749_s17 = scalar_lea.vmem %s4370_s13, 1024  ;;  %p3757_p13 = scmp.lt.s32.totalorder %s4370_s13, %s4370_s13 }
  0x5c   : > { %p3750_p10 = scmp.ne.s32.totalorder %s4370_s13, %s3749_s17  ;;  %p3758_p0 = scmp.lt.s32.totalorder %s3749_s17, %s3749_s17 }
  0x5e   : > { %p3752_p11 = pnand %p3750_p10, %p4380_p7  ;;  %p3759_p2 = por %p3758_p0, %p3757_p13 }
  0x60   : > { %p3753_p12 = pneg %p3752_p11 }
  0x62   : > { %p3760_p4 = pnand %p3759_p2, %p3753_p12 }
  0x64   : > { %3763 = shalt.err (!%p3760_p4)
}
  0x65   : > { %3422 = dma.hbm_to_vmem [thread:$0]  (!%p4366_p5), %s5667_s14, 1024, %s4370_s13, [#allocation17], %s5605_s4, %s5605_s4, %s5607_s6  }
  0x66   : > { %s50_s1 = sadd.s32 1, %s4154_s26  ;;  %s81_s3 = sadd.s32 1, %s4142_s24 }
  0x67   : > { %p4427_p1 = scmp.ge.s32.totalorder %s50_s1, 2  ;;  %p88_p3 = scmp.ne.s32.totalorder %s4142_s24, %s4138_s23 }
  0x68   : > { %p5611_p6 = scmp.eq.s32.totalorder %s4162_s28, 0  ;;  %p94_p8 = scmp.ne.s32.totalorder %s4138_s23, %s4134_s2 }
  0x69   : > { %s5768_s1 = smov (%p4427_p1, %s50_s1), 0  ;;  %p5671_p10 = scmp.eq.s32.totalorder %s4353_s29, 0 }
  0x6a   : > { %5669 = sst [smem:[#allocation39_spill]] %s5768_s1  ;;  %p4442_p9 = por %p5611_p6, %p88_p3 }
  0x6b   : > { %p4448_p11 = por %p5671_p10, %p94_p8  ;;  %s4454_s25 = ssub.s32 %s4154_s26, %s5768_s1 }
  0x6c   : > { %p5610_p12 = scmp.lt.s32.totalorder %s4162_s28, 6  ;;  %p79_p13 = scmp.eq.s32.totalorder %s4454_s25, 0 }
  0x6d   : > { %s5672_s9 = scalar_select %p4448_p11, 1, 0 }
  0x6e   : > { %s615_s15 = sand.u32 1, %s4142_s24   ;;  %s3089_s19 = sshll.u32 %s4154_s26, 11 }
  0x6f   : > { %5673 = sst [smem:[#allocation40_spill]] %s5672_s9  ;;  %s2941_s17 = sshll.u32 %s615_s15, 7 }
  0x70   : > { %s4461_s8 = scalar_select %p79_p13, %s4142_s24, %s81_s3  }
  0x71   : > { %s5675_s6 = sld [smem:[#allocation46_spill]]  ;;  %s617_s14 = scalar_lea.vmem [#allocation7], %s2941_s17 }
  0x72   : > { %5674 = sst [smem:[#allocation41_spill]] %s4461_s8  ;;  %s625_s1 = sshll.u32 %s617_s14, 4  ;;  %s4477_s1 = int_to_ptr.vmem [resolvable:$true] %s625_s1 }
  0x73   : > { %p4473_p0 = pnand %p5610_p12, %p4442_p9  ;;  %s5677_s3 = sand.u32 1, %s4162_s28  }
  0x74   : > { %s4481_s4 = scalar_lea.sflag [#allocation8], %s5677_s3 }
  0x75   : > { %p3766_p4 = pneg %p4473_p0 }
  0x77   : > { %s4467_s10 = scalar_lea.hbm %s5675_s6, %s3089_s19  ;;  %s3769_s17 = scalar_lea.hbm %s5675_s6, 4096 }
  0x78   : > { %s3764_s15 = scalar_lea.hbm %s4467_s10, 2048  ;;  %p3770_p9 = scmp.lt.u32.totalorder %s4467_s10, %s5675_s6 }
  0x79   : > { %p3765_p2 = scmp.ne.s32.totalorder %s4467_s10, %s3764_s15  ;;  %p3771_p10 = scmp.lt.u32.totalorder %s3769_s17, %s3764_s15 }
  0x7a   : > { %p3773_p12 = scmp.lt.u32.totalorder %s3764_s15, %s4467_s10 }
  0x7b   : > { %p3767_p3 = pnand %p3766_p4, %p3765_p2  ;;  %p3772_p13 = por %p3771_p10, %p3770_p9 }
  0x7d   : > { %p3768_p8 = pneg %p3767_p3  ;;  %p3774_p6 = por %p3773_p12, %p3772_p13 }
  0x7f   : > { %p3775_p11 = pnand %p3774_p6, %p3768_p8 }
  0x81   : > { %3778 = shalt.err (!%p3775_p11)
}
  0x82   : > { %s3779_s3 = scalar_lea.vmem %s4477_s1, 2048  ;;  %s4168_s14 = smov [#allocation7]  }
  0x83   : > { %p3780_p2 = scmp.ne.s32.totalorder %s4477_s1, %s3779_s3  ;;  %s3784_s13 = sshll.u32 %s4168_s14, 4  ;;  %s3785_s13 = int_to_ptr.vmem [resolvable:$false] %s3784_s13 }
  0x84   : > { %s3786_s19 = scalar_lea.vmem %s3785_s13, 4096  ;;  %p3787_p7 = scmp.lt.s32.totalorder %s4477_s1, %s3785_s13 }
  0x85   : > { %p3782_p3 = pnand %p3780_p2, %p3766_p4  ;;  %p3788_p9 = scmp.lt.s32.totalorder %s3786_s19, %s3779_s3 }
  0x87   : > { %p3783_p5 = pneg %p3782_p3  ;;  %p3789_p10 = por %p3788_p9, %p3787_p7 }
  0x89   : > { %p3790_p12 = pnand %p3789_p10, %p3783_p5 }
  0x8b   : > { %3793 = shalt.err (!%p3790_p12)
}
  0x8c   : > { %s5617_s15 = smov 128   ;;  %s5618_s17 = smov 8  }
  0x8d   : > { %3429 = dma.hbm_to_vmem [thread:$0]  (!%p4473_p0), %s4467_s10, 2048, %s4477_s1, %s4481_s4, %s5617_s15, %s5617_s15, %s5618_s17  }
  0x8e   : > { %s53_s21 = sadd.s32 1, %s4158_s27  ;;  %s135_s3 = sadd.s32 1, %s4118_s20 }
  0x8f   : > { %s5770_s21 = smov (!%p4427_p1, %s53_s21), %s4158_s27  ;;  %p142_p5 = scmp.ne.s32.totalorder %s4118_s20, %s4114_s30 }
  0x90   : > { %p148_p7 = scmp.ne.s32.totalorder %s4114_s30, %s4110_s0  ;;  %p55_p6 = scmp.ge.s32.totalorder %s5770_s21, 3 }
  0x91   : > { %p5678_p11 = scmp.eq.s32.totalorder %s4162_s28, 0  ;;  %p5680_p8 = scmp.eq.s32.totalorder %s4353_s29, 0 }
  0x92   : > { %s5772_s21 = smov (%p55_p6, %s5770_s21), 0  ;;  %s660_s10 = sand.u32 1, %s4118_s20  }
  0x93   : > { %p4523_p4 = por %p142_p5, %p5678_p11  ;;  %p4529_p13 = por %p148_p7, %p5680_p8 }
  0x94   : > { %5683 = sst [smem:[#allocation43_spill]] %s5772_s21  ;;  %s3090_s1 = sshll.u32 %s4158_s27, 11 }
  0x95   : > { %s5681_s2 = scalar_select %p4529_p13, 1, 0 }
  0x96   : > { %s104_s0 = ssub.s32 %s4158_s27, %s5772_s21  ;;  %s2949_s7 = sshll.u32 %s660_s10, 7 }
  0x97   : > { %5682 = sst [smem:[#allocation42_spill]] %s5681_s2  ;;  %s106_s13 = sor.u32 %s104_s0, %s4454_s25 }
  0x98   : > { %p133_p1 = scmp.eq.s32.totalorder %s104_s0, 0  ;;  %p4540_p0 = scmp.eq.s32.totalorder %s106_s13, 0 }
  0x99   : > { %s5686_s8 = sld [smem:[#allocation48_spill]]  ;;  %s662_s2 = scalar_lea.vmem [#allocation10], %s2949_s7 }
  0x9a   : > { %s5684_s19 = scalar_select %p4540_p0, 1, 0 }
  0x9b   : > { %s4545_s15 = scalar_select %p133_p1, %s4118_s20, %s135_s3  }
  0x9c   : > { %s669_s30 = sshll.u32 %s662_s2, 4  ;;  %p5687_p2 = scmp.lt.s32.totalorder %s4162_s28, 6  ;;  %s4552_s30 = int_to_ptr.vmem [resolvable:$true] %s669_s30 }
  0x9d   : > { %5685 = sst [smem:[#allocation44_spill]] %s4545_s15  ;;  %s5689_s5 = sld [smem:[#allocation50_spill]] }
  0x9e   : > { %p4558_p3 = pnand %p5687_p2, %p4523_p4  ;;  %s690_s17 = scalar_lea.vmem [#allocation12], %s2949_s7 }
  0x9f   : > { %s4550_s24 = scalar_lea.hbm %s5686_s8, %s3090_s1  ;;  %s4567_s0 = sshll.u32 %s690_s17, 4  ;;  %s4603_s0 = int_to_ptr.vmem [resolvable:$true] %s4567_s0 }
  0xa0   : > { %s5688_s25 = scalar_select %p4558_p3, 1, 0 }
  0xa1   : > { %s5690_s2 = sand.u32 1, %s4162_s28   ;;  %s3794_s21 = scalar_lea.hbm %s4550_s24, 2048 }
  0xa2   : > { %s4571_s13 = scalar_lea.sflag [#allocation11], %s5690_s2  ;;  %p3795_p9 = scmp.ne.s32.totalorder %s4550_s24, %s3794_s21 }
  0xa3   : > { %s4565_s6 = scalar_lea.hbm %s5689_s5, %s3090_s1  ;;  %p5631_p10 = pneg %p4558_p3 }
  0xa4   : > { %s3799_s10 = scalar_lea.hbm %s5686_s8, 6144  ;;  %p3800_p7 = scmp.lt.u32.totalorder %s4550_s24, %s5686_s8 }
  0xa5   : > { %p3797_p12 = pnand %p5631_p10, %p3795_p9  ;;  %p3801_p6 = scmp.lt.u32.totalorder %s3799_s10, %s3794_s21 }
  0xa6   : > { %p3803_p4 = scmp.lt.u32.totalorder %s3794_s21, %s4550_s24 }
  0xa7   : > { %p3798_p5 = pneg %p3797_p12  ;;  %p3802_p11 = por %p3801_p6, %p3800_p7 }
  0xa9   : > { %p3804_p8 = por %p3803_p4, %p3802_p11 }
  0xab   : > { %p3805_p1 = pnand %p3804_p8, %p3798_p5 }
  0xad   : > { %3808 = shalt.err (!%p3805_p1)
}
  0xae   : > { %s3809_s7 = scalar_lea.vmem %s4552_s30, 2048  ;;  %s4171_s17 = smov [#allocation10]  }
  0xaf   : > { %p3810_p2 = scmp.ne.s32.totalorder %s4552_s30, %s3809_s7  ;;  %s3814_s2 = sshll.u32 %s4171_s17, 4  ;;  %s3815_s2 = int_to_ptr.vmem [resolvable:$false] %s3814_s2 }
  0xb0   : > { %s3816_s15 = scalar_lea.vmem %s3815_s2, 4096  ;;  %p3817_p13 = scmp.lt.s32.totalorder %s4552_s30, %s3815_s2 }
  0xb1   : > { %p3812_p9 = pnand %p3810_p2, %p5631_p10  ;;  %p3818_p7 = scmp.lt.s32.totalorder %s3816_s15, %s3809_s7 }
  0xb3   : > { %p3813_p12 = pneg %p3812_p9  ;;  %p3819_p6 = por %p3818_p7, %p3817_p13 }
  0xb5   : > { %p3820_p11 = pnand %p3819_p6, %p3813_p12 }
  0xb7   : > { %3823 = shalt.err (!%p3820_p11)
}
  0xb8   : > { %s5691_s21 = smov 8   ;;  %s5692_s14 = smov 128  }
  0xb9   : > { %3435 = dma.hbm_to_vmem [thread:$0]  (!%p4558_p3), %s4550_s24, 2048, %s4552_s30, %s4571_s13, %s5692_s14, %s5692_s14, %s5691_s21  }
  0xba   : > { %s4172_s3 = smov [#allocation4]   ;;  %s4173_s1 = smov [#allocation15]  }
  0xbb   : > { %s532_s10 = sshll.u32 %s4172_s3, 4  ;;  %s564_s7 = sshll.u32 %s4173_s1, 4  ;;  %s533_s10 = int_to_ptr.vmem [resolvable:$true] %s532_s10  ;;  %s565_s7 = int_to_ptr.vmem [resolvable:$true] %s564_s7 }
  0xbc   : > { %s5693_s15 = sld [smem:[#allocation45_spill]]  ;;  %p5694_p5 = scmp.ne.s32.totalorder %s5666_s18, 0 }
  0xc2   : > { %s3824_s8 = scalar_lea.hbm %s5693_s15, 2048 }
  0xc3   : > { %p3825_p13 = scmp.ne.s32.totalorder %s5693_s15, %s3824_s8  ;;  %p3831_p1 = scmp.lt.u32.totalorder %s3824_s8, %s5693_s15 }
  0xc5   : > { %p3827_p4 = pnand %p3825_p13, %p5694_p5 }
  0xc7   : > { %p3828_p8 = pneg %p3827_p4 }
  0xc9   : > { %p3833_p2 = pnand %p3831_p1, %p3828_p8 }
  0xcb   : > { %3836 = shalt.err (!%p3833_p2)
}
  0xcc   : > { %s3837_s24 = scalar_lea.vmem %s533_s10, 2048  ;;  %p3845_p6 = scmp.lt.s32.totalorder %s533_s10, %s533_s10 }
  0xcd   : > { %p3838_p9 = scmp.ne.s32.totalorder %s533_s10, %s3837_s24  ;;  %p3846_p11 = scmp.lt.s32.totalorder %s3837_s24, %s3837_s24 }
  0xcf   : > { %p3840_p12 = pnand %p3838_p9, %p5694_p5  ;;  %p3847_p10 = por %p3846_p11, %p3845_p6 }
  0xd1   : > { %p3841_p7 = pneg %p3840_p12 }
  0xd3   : > { %p3848_p3 = pnand %p3847_p10, %p3841_p7 }
  0xd5   : > { %3851 = shalt.err (!%p3848_p3)
}
  0xd6   : > { %p5695_p13 = scmp.ne.s32.totalorder %s5664_s11, 0  ;;  %s5696_s20 = smov 4  }
  0xd7   : > { %s5697_s9 = smov 64   ;;  %s5698_s12 = sld [smem:[#allocation57_spill]] }
  0xd8   : > { %3413 = dma.hbm_to_vmem [thread:$0]  (!%p5695_p13), %s5693_s15, 2048, %s533_s10, [#allocation5], %s5697_s9, %s5697_s9, %s5696_s20  }
  0xdd   : > { %s3852_s3 = scalar_lea.hbm %s5698_s12, 1024 }
  0xde   : > { %p3853_p10 = scmp.ne.s32.totalorder %s5698_s12, %s3852_s3  ;;  %p3859_p8 = scmp.lt.u32.totalorder %s3852_s3, %s5698_s12 }
  0xe0   : > { %p3855_p3 = pnand %p3853_p10, %p5694_p5 }
  0xe2   : > { %p3856_p4 = pneg %p3855_p3 }
  0xe4   : > { %p3861_p1 = pnand %p3859_p8, %p3856_p4 }
  0xe6   : > { %3864 = shalt.err (!%p3861_p1)
}
  0xe7   : > { %s3865_s24 = scalar_lea.vmem %s565_s7, 1024  ;;  %p3873_p7 = scmp.lt.s32.totalorder %s565_s7, %s565_s7 }
  0xe8   : > { %p3866_p2 = scmp.ne.s32.totalorder %s565_s7, %s3865_s24  ;;  %p3874_p6 = scmp.lt.s32.totalorder %s3865_s24, %s3865_s24 }
  0xea   : > { %p3868_p9 = pnand %p3866_p2, %p5694_p5  ;;  %p3875_p11 = por %p3874_p6, %p3873_p7 }
  0xec   : > { %p3869_p12 = pneg %p3868_p9 }
  0xee   : > { %p3876_p0 = pnand %p3875_p11, %p3869_p12 }
  0xf0   : > { %3879 = shalt.err (!%p3876_p0)
}
  0xf1   : > { %3419 = dma.hbm_to_vmem [thread:$0]  (!%p5695_p13), %s5698_s12, 1024, %s565_s7, [#allocation14], %s5697_s9, %s5697_s9, %s5696_s20  }
  0xf2   : > { %s4174_s8 = smov [#allocation18]   ;;  %s3880_s1 = scalar_lea.hbm %s5589_s16, 1024 }
  0xf3   : > { %s596_s21 = sshll.u32 %s4174_s8, 4  ;;  %p3881_p0 = scmp.ne.s32.totalorder %s5589_s16, %s3880_s1  ;;  %s597_s21 = int_to_ptr.vmem [resolvable:$true] %s596_s21 }
  0xf4   : > { %p3887_p4 = scmp.lt.u32.totalorder %s3880_s1, %s5589_s16 }
  0xf5   : > { %p3883_p10 = pnand %p3881_p0, %p5694_p5 }
  0xf7   : > { %p3884_p3 = pneg %p3883_p10 }
  0xf9   : > { %p3889_p8 = pnand %p3887_p4, %p3884_p3 }
  0xfb   : > { %3892 = shalt.err (!%p3889_p8)
}
  0xfc   : > { %s3893_s7 = scalar_lea.vmem %s597_s21, 1024  ;;  %p3901_p12 = scmp.lt.s32.totalorder %s597_s21, %s597_s21 }
  0xfd   : > { %p3894_p1 = scmp.ne.s32.totalorder %s597_s21, %s3893_s7  ;;  %p3902_p7 = scmp.lt.s32.totalorder %s3893_s7, %s3893_s7 }
  0xff   : > { %p3896_p2 = pnand %p3894_p1, %p5694_p5  ;;  %p3903_p6 = por %p3902_p7, %p3901_p12 }
 0x101   : > { %p3897_p9 = pneg %p3896_p2 }
 0x103   : > { %p3904_p11 = pnand %p3903_p6, %p3897_p9 }
 0x105   : > { %3907 = shalt.err (!%p3904_p11)
}
 0x106   : > { %s5699_s8 = sld [smem:[#allocation33_spill]]  ;;  %s5700_s18 = sld [smem:[#allocation32_spill]] }
 0x107   : > { %3425 = dma.hbm_to_vmem [thread:$0]  (!%p5695_p13), %s5589_s16, 1024, %s597_s21, [#allocation17], %s5697_s9, %s5697_s9, %s5696_s20  }
 0x108   : > { %s109_s11 = sadd.s32 1, %s4130_s22  ;;  %p5701_p0 = scmp.ne.s32.totalorder %s5684_s19, 0 }
 0x109   : > { %p5702_p10 = scmp.eq.s32.totalorder %s4162_s28, 0  ;;  %s637_s1 = sand.u32 1, %s4130_s22  }
 0x10a   : > { %s4674_s14 = scalar_select %p5701_p0, %s4130_s22, %s109_s11  }
 0x10b   : > { %s2946_s17 = sshll.u32 %s4154_s26, 4  ;;  %p5704_p8 = scmp.eq.s32.totalorder %s4353_s29, 0 }
 0x10c   : > { %p116_p5 = scmp.ne.s32.totalorder %s4130_s22, %s5699_s8  ;;  %p122_p4 = scmp.ne.s32.totalorder %s5699_s8, %s5700_s18 }
 0x10d   : > { %s2945_s19 = sshll.u32 %s637_s1, 6  ;;  %s2947_s2 = sshll.u32 %s4158_s27, 5 }
 0x10e   : > { %p4678_p3 = por %p116_p5, %p5702_p10  ;;  %p4688_p13 = por %p122_p4, %p5704_p8 }
 0x10f   : > { %s645_s30 = sadd.s32 %s2947_s2, %s2946_s17  ;;  %s639_s24 = scalar_lea.vmem [#allocation9], %s2945_s19 }
 0x110   : > { %s5705_s21 = scalar_select %p4688_p13, 1, 0 }
 0x111   : > { %s648_s7 = sshll.u32 %s639_s24, 4  ;;  %s2948_s10 = sshll.u32 %s645_s30, 6  ;;  %s4693_s7 = int_to_ptr.vmem [resolvable:$true] %s648_s7 }
 0x112   : > { %s5706_s8 = sld [smem:[#allocation47_spill]]  ;;  %p5707_p1 = scmp.lt.s32.totalorder %s4162_s28, 6 }
 0x113   : > { %s3908_s1 = scalar_lea.hbm %s4565_s6, 2048  ;;  %p5709_p12 = scmp.ne.s32.totalorder %s5688_s25, 0 }
 0x114   : > { %p4704_p2 = pnand %p5707_p1, %p4678_p3  ;;  %p3909_p9 = scmp.ne.s32.totalorder %s4565_s6, %s3908_s1 }
 0x115   : > { %p5710_p7 = pneg %p5709_p12  ;;  %s3913_s2 = scalar_lea.hbm %s5689_s5, 6144 }
 0x116   : > { %p3914_p5 = scmp.lt.u32.totalorder %s4565_s6, %s5689_s5  ;;  %p3915_p0 = scmp.lt.u32.totalorder %s3913_s2, %s3908_s1 }
 0x117   : > { %p3911_p6 = pnand %p3909_p9, %p5710_p7  ;;  %p3917_p3 = scmp.lt.u32.totalorder %s3908_s1, %s4565_s6 }
 0x118   : > { %s4698_s18 = scalar_lea.hbm %s5706_s8, %s2948_s10  ;;  %p3916_p10 = por %p3915_p0, %p3914_p5 }
 0x119   : > { %p3912_p11 = pneg %p3911_p6 }
 0x11a   : > { %p3918_p4 = por %p3917_p3, %p3916_p10 }
 0x11c   : > { %p3919_p8 = pnand %p3918_p4, %p3912_p11 }
 0x11e   : > { %3922 = shalt.err (!%p3919_p8)
}
 0x11f   : > { %s3923_s3 = scalar_lea.vmem %s4603_s0, 2048  ;;  %p5711_p9 = pmov %p5710_p7 }
 0x120   : > { %p3924_p1 = scmp.ne.s32.totalorder %s4603_s0, %s3923_s3  ;;  %s4175_s10 = smov [#allocation12]  }
 0x121   : > { %s3928_s23 = sshll.u32 %s4175_s10, 4  ;;  %s3929_s23 = int_to_ptr.vmem [resolvable:$false] %s3928_s23 }
 0x122   : > { %p3926_p7 = pnand %p3924_p1, %p5711_p9  ;;  %s3930_s11 = scalar_lea.vmem %s3929_s23, 4096 }
 0x123   : > { %p3931_p13 = scmp.lt.s32.totalorder %s4603_s0, %s3929_s23  ;;  %p3932_p5 = scmp.lt.s32.totalorder %s3930_s11, %s3923_s3 }
 0x124   : > { %p3927_p6 = pneg %p3926_p7 }
 0x125   : > { %p3933_p0 = por %p3932_p5, %p3931_p13 }
 0x127   : > { %p3934_p10 = pnand %p3933_p0, %p3927_p6 }
 0x129   : > { %3937 = shalt.err (!%p3934_p10)
}
 0x12a   : > { %3438 = dma.hbm_to_vmem [thread:$0]  (!%p5709_p12), %s4565_s6, 2048, %s4603_s0, %s4571_s13, %s5697_s9, %s5697_s9, %s5696_s20  }
 0x12b   : > { %s3938_s1 = scalar_lea.hbm %s4698_s18, 1024  ;;  %p3940_p13 = pneg %p4704_p2 }
 0x12c   : > { %p3939_p11 = scmp.ne.s32.totalorder %s4698_s18, %s3938_s1  ;;  %s3943_s19 = scalar_lea.hbm %s5706_s8, 6144 }
 0x12d   : > { %p3944_p8 = scmp.lt.u32.totalorder %s4698_s18, %s5706_s8  ;;  %p3945_p1 = scmp.lt.u32.totalorder %s3943_s19, %s3938_s1 }
 0x12e   : > { %p3941_p3 = pnand %p3940_p13, %p3939_p11  ;;  %p3947_p7 = scmp.lt.u32.totalorder %s3938_s1, %s4698_s18 }
 0x12f   : > { %p3946_p9 = por %p3945_p1, %p3944_p8 }
 0x130   : > { %p3942_p4 = pneg %p3941_p3 }
 0x131   : > { %p3948_p12 = por %p3947_p7, %p3946_p9 }
 0x133   : > { %p3949_p6 = pnand %p3948_p12, %p3942_p4 }
 0x135   : > { %3952 = shalt.err (!%p3949_p6)
}
 0x136   : > { %s3953_s6 = scalar_lea.vmem %s4693_s7, 1024  ;;  %s4176_s0 = smov [#allocation9]  }
 0x137   : > { %p3954_p5 = scmp.ne.s32.totalorder %s4693_s7, %s3953_s6  ;;  %s3958_s13 = sshll.u32 %s4176_s0, 4  ;;  %s3959_s13 = int_to_ptr.vmem [resolvable:$false] %s3958_s13 }
 0x138   : > { %s3960_s24 = scalar_lea.vmem %s3959_s13, 2048  ;;  %p3961_p11 = scmp.lt.s32.totalorder %s4693_s7, %s3959_s13 }
 0x139   : > { %p3956_p0 = pnand %p3954_p5, %p3940_p13  ;;  %p3962_p3 = scmp.lt.s32.totalorder %s3960_s24, %s3953_s6 }
 0x13b   : > { %p3957_p10 = pneg %p3956_p0  ;;  %p3963_p8 = por %p3962_p3, %p3961_p11 }
 0x13d   : > { %p3964_p1 = pnand %p3963_p8, %p3957_p10 }
 0x13f   : > { %3967 = shalt.err (!%p3964_p1)
}
 0x140   : > { %3432 = dma.hbm_to_vmem [thread:$0]  (!%p4704_p2), %s4698_s18, 1024, %s4693_s7, %s4481_s4, %s5697_s9, %s5697_s9, %s5696_s20  }
 0x141   : > { %s5712_s3 = sld [smem:[#allocation38_spill]] }
 0x147   : > { %p5713_p13 = scmp.ne.s32.totalorder %s5712_s3, 0 }
 0x148   : > { %p5714_p4 = scmp.eq.s32.totalorder (!%p5713_p13), %s4353_s29, 0 }
 0x149   : > { %727 = sbr.rel (%p5713_p13) target bundleno = 2577 (0xa11), region = 92 }
 0x150   : > { %4077 = dma.done.wait (%p5714_p4), [#allocation5], 2048   ;;  %p5715_p9 = pmov %p5714_p4 }
 0x151   : > { %s5716_s10 = sld [smem:[#allocation34_spill]]  ;;  %s5717_s23 = sld [smem:[#allocation40_spill]] }
 0x152   : > { %4079 = vsyncadd (%p5715_p9), [#allocation5], 4294965248  ;;  %s733_s12 = sand.u32 1, %s4353_s29  }
 0x153   : > { %s734_s25 = scalar_lea.sflag [#allocation8], %s733_s12 }
 0x157   : > { %s735_s11 = sand.u32 1, %s5716_s10   ;;  %p5718_p7 = scmp.ne.s32.totalorder %s5717_s23, 0 }
 0x158   : > { %s2957_s1 = sshll.u32 %s735_s11, 7 }
 0x159   : > { %s4772_s17 = scalar_lea.vmem [#allocation7], %s2957_s1 }
 0x15a   : > { %4081 = dma.done.wait (%p5718_p7), %s734_s25, 2048  }
 0x15b   : > { %4083 = vsyncadd (%p5718_p7), %s734_s25, 4294965248  ;;  %s5719_s4 = sld [smem:[#allocation33_spill]]  ;;  %p5720_p2 = scmp.ne.s32.totalorder %s5705_s21, 0 }
 0x161   : > { %s744_s20 = sand.u32 1, %s5719_s4  }
 0x162   : > { %s2958_s9 = sshll.u32 %s744_s20, 6 }
 0x163   : > { %s4779_s7 = scalar_lea.vmem [#allocation9], %s2958_s9 }
 0x164   : > { %4085 = dma.done.wait (%p5720_p2), %s734_s25, 1024  }
 0x165   : > { %4087 = vsyncadd (%p5720_p2), %s734_s25, 4294966272  ;;  %s5721_s18 = sld [smem:[#allocation30_spill]]  ;;  %s5722_s19 = sld [smem:[#allocation42_spill]] }
 0x166   : > { %s752_s6 = scalar_lea.sflag [#allocation11], %s733_s12 }
 0x16b   : > { %s753_s2 = sand.u32 1, %s5721_s18   ;;  %p5723_p12 = scmp.ne.s32.totalorder %s5722_s19, 0 }
 0x16c   : > { %s2959_s30 = sshll.u32 %s753_s2, 7 }
 0x16d   : > { %s4786_s0 = scalar_lea.vmem [#allocation10], %s2959_s30 }
 0x16e   : > { %4089 = dma.done.wait (%p5723_p12), %s752_s6, 4096  }
 0x16f   : > { %4091 = vsyncadd (%p5723_p12), %s752_s6, 4294963200  ;;  %s4792_s13 = scalar_lea.vmem [#allocation12], %s2959_s30  ;;  %p5724_p6 = pmov %p5714_p4 }
 0x170   : > { %p5725_p5 = pmov %p5714_p4 }
 0x171   : > { %4093 = dma.done.wait (%p5724_p6), [#allocation14], 2048  }
 0x172   : > { %4095 = vsyncadd (%p5725_p5), [#allocation14], 4294965248  ;;  %p5726_p0 = pmov %p5714_p4 }
 0x174   : > { %4097 = dma.done.wait (%p5726_p0), [#allocation17], 2048   ;;  %p5727_p10 = pmov %p5726_p0 }
 0x175   : > { %s5728_s21 = sld [smem:[#allocation37_spill]]  ;;  %s5729_s24 = sld [smem:[#allocation36_spill]] }
 0x176   : > { %4099 = vsyncadd (%p5727_p10), [#allocation17], 4294965248  ;;  %s5730_s12 = sld [smem:[#allocation51_spill]]  ;;  %s5731_s4 = sld [smem:[#allocation49_spill]] }
 0x177   : > { %s5732_s19 = sld [smem:[#allocation52_spill]] }
 0x17b   : > { %p860_p11 = scmp.lt.s32.totalorder %s5728_s21, 2  ;;  %p874_p3 = scmp.eq.s32.totalorder %s5728_s21, 0 }
 0x17c   : > { %p875_p8 = scmp.eq.s32.totalorder %s5729_s24, 0  ;;  %s5733_s24 = sld [smem:[#allocation53_spill]] }
 0x17d   : > { %s5774_s21 = smov (!%p860_p11, %s5728_s21), 2 }
 0x17e   : > { %p876_p1 = pnand %p875_p8, %p874_p3  ;;  %s2965_s3 = sshll.u32 %s5774_s21, 1 }
 0x17f   : > { %s866_s11 = scalar_lea.vmem %s5730_s12, %s5774_s21  ;;  %s4816_s20 = scalar_lea.vmem %s5731_s4, %s2965_s3  ;;  %v3580_v0 = vld [vmem:[#allocation4] sm:$0xff] (!%p876_p1)   ;;  %v3581_v1 = vld [vmem:[#allocation4 + $0x8] sm:$0xff] (!%p876_p1)   ;;  %v3582_v2 = vld [vmem:[#allocation4 + $0x10] sm:$0xff] (!%p876_p1)  }
 0x180   : > { %s869_s2 = scalar_lea.vmem %s5732_s19, %s5774_s21  ;;  %879 = sbr.rel (%p876_p1) target bundleno = 392 (0x188), region = 132  ;;  %1008 = vst [vmem:[#allocation2] sm:$0xff] (!%p876_p1), %v3580_v0  ;;  %1009 = vst [vmem:[#allocation2 + $0x8] sm:$0xff] (!%p876_p1), %v3581_v1  ;;  %v3583_v3 = vld [vmem:[#allocation4 + $0x18] sm:$0xff] (!%p876_p1)   ;;  %v3584_v4 = vld [vmem:[#allocation4 + $0x20] sm:$0xff] (!%p876_p1)  }
 0x181   : > { %1010 = vst [vmem:[#allocation2 + $0x10] sm:$0xff] (!%p876_p1), %v3582_v2  ;;  %1011 = vst [vmem:[#allocation2 + $0x18] sm:$0xff] (!%p876_p1), %v3583_v3  ;;  %v3585_v5 = vld [vmem:[#allocation4 + $0x28] sm:$0xff] (!%p876_p1)   ;;  %v3586_v6 = vld [vmem:[#allocation4 + $0x30] sm:$0xff] (!%p876_p1)  }
 0x182   : > { %s872_s5 = scalar_lea.vmem %s5733_s24, %s5774_s21  ;;  %1012 = vst [vmem:[#allocation2 + $0x20] sm:$0xff] (!%p876_p1), %v3584_v4  ;;  %1013 = vst [vmem:[#allocation2 + $0x28] sm:$0xff] (!%p876_p1), %v3585_v5  ;;  %v3587_v7 = vld [vmem:[#allocation4 + $0x38] sm:$0xff] (!%p876_p1)   ;;  %v3588_v8 = vld [vmem:[#allocation4 + $0x40] sm:$0xff] (!%p876_p1)  }
 0x183   : > { %1014 = vst [vmem:[#allocation2 + $0x30] sm:$0xff] (!%p876_p1), %v3586_v6  ;;  %1015 = vst [vmem:[#allocation2 + $0x38] sm:$0xff] (!%p876_p1), %v3587_v7  ;;  %v3589_v9 = vld [vmem:[#allocation4 + $0x48] sm:$0xff] (!%p876_p1)   ;;  %v3590_v10 = vld [vmem:[#allocation4 + $0x50] sm:$0xff] (!%p876_p1)  }
 0x184   : > { %1016 = vst [vmem:[#allocation2 + $0x40] sm:$0xff] (!%p876_p1), %v3588_v8  ;;  %1017 = vst [vmem:[#allocation2 + $0x48] sm:$0xff] (!%p876_p1), %v3589_v9  ;;  %v3591_v11 = vld [vmem:[#allocation4 + $0x58] sm:$0xff] (!%p876_p1)   ;;  %v3592_v12 = vld [vmem:[#allocation4 + $0x60] sm:$0xff] (!%p876_p1)  }
 0x185   : > { %1018 = vst [vmem:[#allocation2 + $0x50] sm:$0xff] (!%p876_p1), %v3590_v10  ;;  %1019 = vst [vmem:[#allocation2 + $0x58] sm:$0xff] (!%p876_p1), %v3591_v11  ;;  %v3593_v13 = vld [vmem:[#allocation4 + $0x68] sm:$0xff] (!%p876_p1)   ;;  %v3594_v14 = vld [vmem:[#allocation4 + $0x70] sm:$0xff] (!%p876_p1)  }
 0x186   : > { %1020 = vst [vmem:[#allocation2 + $0x60] sm:$0xff] (!%p876_p1), %v3592_v12  ;;  %1021 = vst [vmem:[#allocation2 + $0x68] sm:$0xff] (!%p876_p1), %v3593_v13  ;;  %v3595_v15 = vld [vmem:[#allocation4 + $0x78] sm:$0xff] (!%p876_p1)  }
 0x187   : > { %1022 = vst [vmem:[#allocation2 + $0x70] sm:$0xff] %v3594_v14  ;;  %1023 = vst [vmem:[#allocation2 + $0x78] sm:$0xff] %v3595_v15 }
 0x188 PF: > { %v1040_v17 = vld [vmem:[#allocation2] sm:$0xff]  ;;  %v1041_v19 = vld [vmem:[#allocation2 + $0x8] sm:$0xff]  ;;  %v3599_v37 = vld [vmem:[%s4772_s17 + $0x14] ss:$8 sps:$4 sm:$0xff]   ;;  %v4177_v0 = vmov 0  }
 0x189   : > { %v3598_v21 = vld [vmem:[%s4772_s17 + $0x4] ss:$8 sps:$4 sm:$0xff]   ;;  %v1042_v22 = vld [vmem:[#allocation2 + $0x10] sm:$0xff]  ;;  %v1043_v24 = vld [vmem:[#allocation2 + $0x18] sm:$0xff] }
 0x18a   : > { %1168 = vmatprep.mubr.bf16.mxu0 %v3598_v21  ;;  %v3610_v25 = vld [vmem:[%s4772_s17 + $0x44] ss:$8 sps:$4 sm:$0xff]   ;;  %v3596_v35 = vld [vmem:[%s4772_s17] ss:$8 sps:$4 sm:$0xff]   ;;  %v3611_v38 = vld [vmem:[%s4772_s17 + $0x54] ss:$8 sps:$4 sm:$0xff]  }
 0x18b   : > { %1200 = vmatprep.mubr.bf16.mxu1 %v3610_v25  ;;  %v1044_v27 = vld [vmem:[#allocation2 + $0x20] sm:$0xff]  ;;  %v1045_v29 = vld [vmem:[#allocation2 + $0x28] sm:$0xff]  ;;  %v1046_v31 = vld [vmem:[#allocation2 + $0x30] sm:$0xff] }
 0x18c   : > { %v1048_v16 = vld [vmem:[#allocation2 + $0x40] sm:$0xff]  ;;  %v1049_v18 = vld [vmem:[#allocation2 + $0x48] sm:$0xff]  ;;  %v1047_v33 = vld [vmem:[#allocation2 + $0x38] sm:$0xff] }
 0x18d   : > { %3092 = vmatprep.subr.bf16.mxu0 %v1048_v16  ;;  %3358 = vmatprep.subr.bf16.mxu1 %v1048_v16  ;;  %v1050_v20 = vld [vmem:[#allocation2 + $0x50] sm:$0xff]  ;;  %v1051_v23 = vld [vmem:[#allocation2 + $0x58] sm:$0xff]  ;;  %v3622_v34 = vld [vmem:[%s4786_s0 + $0x4] ss:$8 sps:$4 sm:$0xff]  }
 0x18e   : > { %3093 = vmatpush3.bf16.msra.mxu0 %v1040_v17  ;;  %3366 = vmatpush3.bf16.msra.mxu1 %v1040_v17  ;;  %v1052_v26 = vld [vmem:[#allocation2 + $0x60] sm:$0xff]  ;;  %v1053_v28 = vld [vmem:[#allocation2 + $0x68] sm:$0xff]  ;;  %v1054_v30 = vld [vmem:[#allocation2 + $0x70] sm:$0xff] }
 0x18f   : > { %3094 = vmatprep.subr.bf16.mxu0 %v1049_v18  ;;  %3359 = vmatprep.subr.bf16.mxu1 %v1049_v18  ;;  %v1055_v32 = vld [vmem:[#allocation2 + $0x78] sm:$0xff]  ;;  %v3608_v36 = vld [vmem:[%s4772_s17 + $0x40] ss:$8 sps:$4 sm:$0xff]   ;;  %v3628_v42 = vld [vmem:[%s4786_s0 + $0x24] ss:$8 sps:$4 sm:$0xff]  }
 0x190   : > { %v3620_v39 = vld [vmem:[%s4786_s0] ss:$8 sps:$4 sm:$0xff]   ;;  %v3625_v40 = vld [vmem:[%s4786_s0 + $0x14] ss:$8 sps:$4 sm:$0xff]   ;;  %v3623_v41 = vld [vmem:[%s4786_s0 + $0x10] ss:$8 sps:$4 sm:$0xff]  }
 0x191   : > { %v3601_v43 = vld [vmem:[%s4772_s17 + $0x10] ss:$8 sps:$4 sm:$0xff]   ;;  %v3602_v45 = vld [vmem:[%s4772_s17 + $0x24] ss:$8 sps:$4 sm:$0xff]   ;;  %v3626_v47 = vld [vmem:[%s4786_s0 + $0x20] ss:$8 sps:$4 sm:$0xff]  }
 0x192   : > { %3095 = vmatpush3.bf16.msra.mxu0 %v1041_v19  ;;  %3367 = vmatpush3.bf16.msra.mxu1 %v1041_v19  ;;  %v3613_v44 = vld [vmem:[%s4772_s17 + $0x50] ss:$8 sps:$4 sm:$0xff]   ;;  %v3614_v46 = vld [vmem:[%s4772_s17 + $0x64] ss:$8 sps:$4 sm:$0xff]   ;;  %v3631_v48 = vld [vmem:[%s4786_s0 + $0x34] ss:$8 sps:$4 sm:$0xff]  }
 0x193   : > { %3096 = vmatprep.subr.bf16.mxu0 %v1050_v20  ;;  %3360 = vmatprep.subr.bf16.mxu1 %v1050_v20  ;;  %v3629_v49 = vld [vmem:[%s4786_s0 + $0x30] ss:$8 sps:$4 sm:$0xff]   ;;  %v3634_v50 = vld [vmem:[%s4786_s0 + $0x44] ss:$8 sps:$4 sm:$0xff]   ;;  %v3604_v51 = vld [vmem:[%s4772_s17 + $0x20] ss:$8 sps:$4 sm:$0xff]  }
 0x194   : > { %v3616_v52 = vld [vmem:[%s4772_s17 + $0x60] ss:$8 sps:$4 sm:$0xff]   ;;  %v3605_v53 = vld [vmem:[%s4772_s17 + $0x34] ss:$8 sps:$4 sm:$0xff]   ;;  %v3635_v57 = vld [vmem:[%s4786_s0 + $0x50] ss:$8 sps:$4 sm:$0xff]  }
 0x195   : > { %v3617_v54 = vld [vmem:[%s4772_s17 + $0x74] ss:$8 sps:$4 sm:$0xff]   ;;  %v3632_v55 = vld [vmem:[%s4786_s0 + $0x40] ss:$8 sps:$4 sm:$0xff]   ;;  %v3607_v58 = vld [vmem:[%s4772_s17 + $0x30] ss:$8 sps:$4 sm:$0xff]  }
 0x196   : > { %3097 = vmatpush3.bf16.msra.mxu0 %v1042_v22  ;;  %3368 = vmatpush3.bf16.msra.mxu1 %v1042_v22  ;;  %v3637_v56 = vld [vmem:[%s4786_s0 + $0x54] ss:$8 sps:$4 sm:$0xff]   ;;  %v3619_v59 = vld [vmem:[%s4772_s17 + $0x70] ss:$8 sps:$4 sm:$0xff]   ;;  %v3640_v60 = vld [vmem:[%s4786_s0 + $0x64] ss:$8 sps:$4 sm:$0xff]  }
 0x197   : > { %3098 = vmatprep.subr.bf16.mxu0 %v1051_v23  ;;  %3361 = vmatprep.subr.bf16.mxu1 %v1051_v23  ;;  %v3638_v61 = vld [vmem:[%s4786_s0 + $0x60] ss:$8 sps:$4 sm:$0xff]   ;;  %v3644_v62 = vld [vmem:[%s4786_s0 + $0x74] ss:$8 sps:$4 sm:$0xff]   ;;  %v3642_v63 = vld [vmem:[%s4786_s0 + $0x70] ss:$8 sps:$4 sm:$0xff]  }
 0x198   : > { %v3652_v1 = vld [vmem:[%s4792_s13 + $0x40] sm:$0xff]   ;;  %v3654_v3 = vld [vmem:[%s4792_s13 + $0x48] sm:$0xff]   ;;  %v3656_v5 = vld [vmem:[%s4792_s13 + $0x50] sm:$0xff]   ;;  %s5734_s17 = sld [smem:[#allocation36_spill]] }
 0x199   : > { %v3653_v2 = vld [vmem:[%s4792_s13] sm:$0xff]   ;;  %v3655_v4 = vld [vmem:[%s4792_s13 + $0x8] sm:$0xff]   ;;  %v3657_v6 = vld [vmem:[%s4792_s13 + $0x10] sm:$0xff]  }
 0x19a   : > { %3099 = vmatpush3.bf16.msra.mxu0 %v1043_v24  ;;  %3369 = vmatpush3.bf16.msra.mxu1 %v1043_v24  ;;  %v3658_v7 = vld [vmem:[%s4792_s13 + $0x58] sm:$0xff]   ;;  %v3660_v9 = vld [vmem:[%s4792_s13 + $0x60] sm:$0xff]   ;;  %v3662_v11 = vld [vmem:[%s4792_s13 + $0x68] sm:$0xff]  }
 0x19b   : > { %3100 = vmatprep.subr.bf16.mxu0 %v1052_v26  ;;  %3362 = vmatprep.subr.bf16.mxu1 %v1052_v26  ;;  %v3659_v8 = vld [vmem:[%s4792_s13 + $0x18] sm:$0xff]   ;;  %v3661_v10 = vld [vmem:[%s4792_s13 + $0x20] sm:$0xff]   ;;  %v3663_v12 = vld [vmem:[%s4792_s13 + $0x28] sm:$0xff]  }
 0x19c   : > { %v3641_v24 = vld [vmem:[%s4779_s7] sm:$0xff]  }
 0x19e   : > { %3101 = vmatpush3.bf16.msra.mxu0 %v1044_v27  ;;  %3370 = vmatpush3.bf16.msra.mxu1 %v1044_v27  ;;  %p3040_p13 = scmp.ne.s32.totalorder %s5734_s17, 1 }
 0x19f   : > { %3102 = vmatprep.subr.bf16.mxu0 %v1053_v28  ;;  %3363 = vmatprep.subr.bf16.mxu1 %v1053_v28 }
 0x1a2   : > { %3103 = vmatpush3.bf16.msra.mxu0 %v1045_v29  ;;  %3371 = vmatpush3.bf16.msra.mxu1 %v1045_v29 }
 0x1a3   : > { %3104 = vmatprep.subr.bf16.mxu0 %v1054_v30  ;;  %3364 = vmatprep.subr.bf16.mxu1 %v1054_v30 }
 0x1a6   : > { %3105 = vmatpush3.bf16.msra.mxu0 %v1046_v31  ;;  %3372 = vmatpush3.bf16.msra.mxu1 %v1046_v31 }
 0x1a7   : > { %3106 = vmatprep.subr.bf16.mxu0 %v1055_v32  ;;  %3365 = vmatprep.subr.bf16.mxu1 %v1055_v32 }
 0x1aa   : > { %3107 = vmatpush3.bf16.msra.mxu0 %v1047_v33  ;;  %3373 = vmatpush3.bf16.msra.mxu1 %v1047_v33 }
 0x1ab   : > { %1421 = vmatprep.subr.bf16.mxu1 %v3622_v34  ;;  %3156 = vmatprep.subr.bf16.mxu0 %v3652_v1 }
 0x1ad   : > { %1169 = vmatmul.mubr.bf16.vlgmr.msra.gmra.mrb[0].mxu0 %v3596_v35  ;;  %1201 = vmatmul.mubr.bf16.vlgmr.msra.gmra.mrb[0].mxu1 %v3608_v36 }
 0x1ae   : > { %1176 = vmatprep.mubr.bf16.mxu0 %v3599_v37  ;;  %1208 = vmatprep.mubr.bf16.mxu1 %v3611_v38 }
 0x1af   : > { %1422 = vmatpush1.bf16.msra.mxu1 %v3620_v39  ;;  %3157 = vmatpush3.bf16.msra.mxu0 %v3653_v2 }
 0x1b0   : > { %1423 = vmatprep.subr.bf16.mxu1 %v3625_v40  ;;  %3158 = vmatprep.subr.bf16.mxu0 %v3654_v3  ;;  %v3645_v40 = vld [vmem:[%s4779_s7 + $0x8] sm:$0xff]  }
 0x1b3   : > { %1424 = vmatpush1.bf16.msra.mxu1 %v3623_v41  ;;  %3159 = vmatpush3.bf16.msra.mxu0 %v3655_v4 }
 0x1b4   : > { %1425 = vmatprep.subr.bf16.mxu1 %v3628_v42  ;;  %3160 = vmatprep.subr.bf16.mxu0 %v3656_v5 }
 0x1b5   : > { %1177 = vmatmul.mubr.bf16.gmra.mrb[4].mxu0 %v3601_v43  ;;  %1209 = vmatmul.mubr.bf16.gmra.mrb[4].mxu1 %v3613_v44 }
 0x1b6   : > { %1184 = vmatprep.mubr.bf16.mxu0 %v3602_v45  ;;  %1216 = vmatprep.mubr.bf16.mxu1 %v3614_v46 }
 0x1b7   : > { %1426 = vmatpush1.bf16.msra.mxu1 %v3626_v47  ;;  %3161 = vmatpush3.bf16.msra.mxu0 %v3657_v6 }
 0x1b8   : > { %1427 = vmatprep.subr.bf16.mxu1 %v3631_v48  ;;  %3162 = vmatprep.subr.bf16.mxu0 %v3658_v7 }
 0x1bb   : > { %1428 = vmatpush1.bf16.msra.mxu1 %v3629_v49  ;;  %3163 = vmatpush3.bf16.msra.mxu0 %v3659_v8 }
 0x1bc   : > { %1429 = vmatprep.subr.bf16.mxu1 %v3634_v50  ;;  %3164 = vmatprep.subr.bf16.mxu0 %v3660_v9  ;;  %v3647_v9 = vld [vmem:[%s4779_s7 + $0x18] sm:$0xff]  }
 0x1bd   : > { %1185 = vmatmul.mubr.bf16.gmra.mrb[8].mxu0 %v3604_v51  ;;  %1217 = vmatmul.mubr.bf16.gmra.mrb[8].mxu1 %v3616_v52 }
 0x1be   : > { %1192 = vmatprep.mubr.bf16.mxu0 %v3605_v53  ;;  %1224 = vmatprep.mubr.bf16.mxu1 %v3617_v54 }
 0x1bf   : > { %1430 = vmatpush1.bf16.msra.mxu1 %v3632_v55  ;;  %3165 = vmatpush3.bf16.msra.mxu0 %v3661_v10 }
 0x1c0   : > { %1431 = vmatprep.subr.bf16.mxu1 %v3637_v56  ;;  %3166 = vmatprep.subr.bf16.mxu0 %v3662_v11  ;;  %v3646_v56 = vld [vmem:[%s4779_s7 + $0x10] sm:$0xff]  }
 0x1c3   : > { %1432 = vmatpush1.bf16.msra.mxu1 %v3635_v57  ;;  %3167 = vmatpush3.bf16.msra.mxu0 %v3663_v12 }
 0x1c4   : > { %1433 = vmatprep.subr.bf16.mxu1 %v3640_v60 }
 0x1c5   : > { %1193 = vmatmul.mubr.bf16.gmra.mrb[12].mxu0 %v3607_v58  ;;  %1225 = vmatmul.mubr.bf16.gmra.mrb[12].mxu1 %v3619_v59 }
 0x1c6   : > { %1453 = vmatprep.mubr.bf16.mxu1 %v4177_v0 }
 0x1c7   : > { %1434 = vmatpush1.bf16.msra.mxu1 %v3638_v61 }
 0x1c8   : > { %1435 = vmatprep.subr.bf16.mxu1 %v3644_v62 }
 0x1cb   : > { %1436 = vmatpush1.bf16.msra.mxu1 %v3642_v63 }
 0x280   : > { %v3108_v13 = vpop.f32.mrb[0].mxu0  ;;  %v3132_v14 = vpop.f32.mrb[0].mxu1 }
 0x281   : > { %v3109_v15 = vpop.f32.mrb[1].mxu0  ;;  %v3133_v16 = vpop.f32.mrb[1].mxu1 }
 0x282   : > { %v3110_v17 = vadd.f32 %v3109_v15, %v3108_v13  ;;  %v3111_v18 = vpop.f32.mrb[2].mxu0  ;;  %v4871_v19 = vadd.f32 %v3133_v16, %v3132_v14  ;;  %v3135_v20 = vpop.f32.mrb[2].mxu1  ;;  %v3648_v14 = vld [vmem:[%s4779_s7 + $0x20] sm:$0xff]   ;;  %v3649_v16 = vld [vmem:[%s4779_s7 + $0x28] sm:$0xff]  }
 0x283   : > { %v3112_v21 = vpop.f32.mrb[3].mxu0  ;;  %v3136_v22 = vpop.f32.mrb[3].mxu1 }
 0x284   : > { %v3113_v23 = vadd.f32 %v3112_v21, %v3111_v18  ;;  %v3137_v25 = vadd.f32 %v3136_v22, %v3135_v20  ;;  %v3650_v18 = vld [vmem:[%s4779_s7 + $0x30] sm:$0xff]   ;;  %v3651_v20 = vld [vmem:[%s4779_s7 + $0x38] sm:$0xff]   ;;  %s3039_s7 = sshll.u32 %s5734_s17, 7 }
 0x285   : > { %v3664_v22 = vld [vmem:[%s4792_s13 + $0x70] sm:$0xff]   ;;  %s4945_s10 = scalar_lea.vmem [#allocation3], %s3039_s7 }
 0x286   : > { %v1233_v26 = vpack.c.bf16 %v3113_v23, %v3110_v17  ;;  %v1237_v27 = vpack.c.bf16 %v3137_v25, %v4871_v19  ;;  %v3665_v23 = vld [vmem:[%s4792_s13 + $0x30] sm:$0xff]   ;;  %3168 = vmatprep.subr.bf16.mxu0 %v3664_v22  ;;  %v3667_v25 = vld [vmem:[%s4792_s13 + $0x38] sm:$0xff]  }
 0x287   : > { %3169 = vmatpush3.bf16.msra.mxu0 %v3665_v23 }
 0x288   : > { %v1305_v28 = vadd.bf16 %v3641_v24, %v1233_v26  ;;  %v3114_v29 = vpop.f32.mrb[4].mxu0  ;;  %v3138_v30 = vpop.f32.mrb[4].mxu1  ;;  %v1309_v15 = vadd.bf16 %v3648_v14, %v1237_v27  ;;  %v3666_v24 = vld [vmem:[%s4792_s13 + $0x78] sm:$0xff]   ;;  %v1331_v26 = vlaneseq }
 0x289   : > { %v3115_v31 = vpop.f32.mrb[5].mxu0  ;;  %v3139_v32 = vpop.f32.mrb[5].mxu1  ;;  %3170 = vmatprep.subr.bf16.mxu0 %v3666_v24 }
 0x28a   : > { %v3116_v33 = vadd.f32 %v3115_v31, %v3114_v29  ;;  %v3117_v34 = vpop.f32.mrb[6].mxu0  ;;  %1454 = vmatmul.mubr.bf16.vlgmr.msra.gmra.mrb[16].mxu1 %v1305_v28  ;;  %v3140_v35 = vadd.f32 %v3139_v32, %v3138_v30  ;;  %v3141_v36 = vpop.f32.mrb[6].mxu1  ;;  %v4893_v27 = vshrl.u32 %v1331_v26, 7  ;;  %v1329_v29 = vld [vmem:[%s4816_s20] sm:$0x3] }
 0x28b   : > { %v3118_v37 = vpop.f32.mrb[7].mxu0  ;;  %1463 = vmatprep.mubr.bf16.mxu1 %v4177_v0  ;;  %v3142_v38 = vpop.f32.mrb[7].mxu1  ;;  %3171 = vmatpush3.bf16.msra.mxu0 %v3667_v25 }
 0x28c   : > { %v3119_v39 = vadd.f32 %v3118_v37, %v3117_v34  ;;  %v3143_v41 = vadd.f32 %v3142_v38, %v3141_v36  ;;  %v1333_v28 = vsub.s32 0, %v4893_v27  ;;  %v1337_v30 = vsub.s32 1, %v4893_v27 }
 0x28e   : > { %v1234_v42 = vpack.c.bf16 %v3119_v39, %v3116_v33  ;;  %v1238_v43 = vpack.c.bf16 %v3143_v41, %v3140_v35  ;;  %v4902_v31 = vrot.slane %v1329_v29, %v1337_v30 }
 0x290   : > { %v3120_v44 = vpop.f32.mrb[8].mxu0  ;;  %v1306_v45 = vadd.bf16 %v3645_v40, %v1234_v42  ;;  %v3144_v46 = vpop.f32.mrb[8].mxu1  ;;  %v1310_v17 = vadd.bf16 %v3649_v16, %v1238_v43 }
 0x291   : > { %v3121_v47 = vpop.f32.mrb[9].mxu0  ;;  %v3145_v48 = vpop.f32.mrb[9].mxu1 }
 0x292   : > { %v3122_v49 = vadd.f32 %v3121_v47, %v3120_v44  ;;  %v3123_v50 = vpop.f32.mrb[10].mxu0  ;;  %1464 = vmatmul.mubr.bf16.gmra.mrb[20].mxu1 %v1306_v45  ;;  %v3146_v51 = vadd.f32 %v3145_v48, %v3144_v46  ;;  %v3147_v52 = vpop.f32.mrb[10].mxu1 }
 0x293   : > { %v3124_v53 = vpop.f32.mrb[11].mxu0  ;;  %1473 = vmatprep.mubr.bf16.mxu1 %v4177_v0  ;;  %v3148_v54 = vpop.f32.mrb[11].mxu1 }
 0x294   : > { %v3125_v55 = vadd.f32 %v3124_v53, %v3123_v50  ;;  %v3149_v57 = vadd.f32 %v3148_v54, %v3147_v52 }
 0x296   : > { %v1235_v58 = vpack.c.bf16 %v3125_v55, %v3122_v49  ;;  %v1239_v59 = vpack.c.bf16 %v3149_v57, %v3146_v51 }
 0x298   : > { %v3126_v60 = vpop.f32.mrb[12].mxu0  ;;  %v1307_v61 = vadd.bf16 %v3646_v56, %v1235_v58  ;;  %v3150_v62 = vpop.f32.mrb[12].mxu1  ;;  %v1311_v19 = vadd.bf16 %v3650_v18, %v1239_v59 }
 0x299   : > { %v3127_v63 = vpop.f32.mrb[13].mxu0  ;;  %v3151_v1 = vpop.f32.mrb[13].mxu1 }
 0x29a   : > { %v3128_v2 = vadd.f32 %v3127_v63, %v3126_v60  ;;  %v3129_v3 = vpop.f32.mrb[14].mxu0  ;;  %1474 = vmatmul.mubr.bf16.gmra.mrb[24].mxu1 %v1307_v61  ;;  %v3152_v4 = vadd.f32 %v3151_v1, %v3150_v62  ;;  %v3153_v5 = vpop.f32.mrb[14].mxu1 }
 0x29b   : > { %v3130_v6 = vpop.f32.mrb[15].mxu0  ;;  %1483 = vmatprep.mubr.bf16.mxu1 %v4177_v0  ;;  %v3154_v7 = vpop.f32.mrb[15].mxu1 }
 0x29c   : > { %v3131_v8 = vadd.f32 %v3130_v6, %v3129_v3  ;;  %v3155_v10 = vadd.f32 %v3154_v7, %v3153_v5 }
 0x29e   : > { %v1236_v11 = vpack.c.bf16 %v3131_v8, %v3128_v2  ;;  %v1240_v12 = vpack.c.bf16 %v3155_v10, %v3152_v4 }
 0x2a0   : > { %v1308_v13 = vadd.bf16 %v3647_v9, %v1236_v11  ;;  %v1312_v21 = vadd.bf16 %v3651_v20, %v1240_v12 }
 0x2a2   : > { %1484 = vmatmul.mubr.bf16.gmra.mrb[28].mxu1 %v1308_v13 }
 0x2a3   : > { %1493 = vmatprep.mubr.bf16.mxu1 %v4177_v0 }
 0x2aa   : > { %1494 = vmatmul.mubr.bf16.gmra.mrb[32].mxu1 %v1309_v15 }
 0x2ab   : > { %1503 = vmatprep.mubr.bf16.mxu1 %v4177_v0 }
 0x2b2   : > { %1504 = vmatmul.mubr.bf16.gmra.mrb[36].mxu1 %v1310_v17 }
 0x2b3   : > { %1513 = vmatprep.mubr.bf16.mxu1 %v4177_v0 }
 0x2ba   : > { %1514 = vmatmul.mubr.bf16.gmra.mrb[40].mxu1 %v1311_v19 }
 0x2bb   : > { %1523 = vmatprep.mubr.bf16.mxu1 %v4177_v0  ;;  %v4900_v0 = vrot.slane %v1329_v29, %v1333_v28 }
 0x2c2   : > { %1524 = vmatmul.mubr.bf16.gmra.mrb[44].mxu1 %v1312_v21 }
 0x35d   : > { %v1455_v32 = vpop.f32.mrb[16].mxu1 }
 0x35e   : > { %v1456_v33 = vadd.f32 %v1455_v32, %v4900_v0  ;;  %v1457_v34 = vpop.f32.mrb[17].mxu1 }
 0x35f   : > { %v1458_v35 = vadd.f32 %v1457_v34, %v4902_v31  ;;  %v1459_v36 = vpop.f32.mrb[18].mxu1 }
 0x360   : > { %v1460_v37 = vadd.f32 %v1459_v36, %v4900_v0  ;;  %v1461_v38 = vpop.f32.mrb[19].mxu1  ;;  %v1534_v40 = vmax.f32 %v1456_v33, 0.0 }
 0x361   : > { %v1462_v39 = vadd.f32 %v1461_v38, %v4902_v31  ;;  %v1535_v42 = vmax.f32 %v1458_v35, 0.0 }
 0x362   : > { %v1536_v41 = vmax.f32 %v1460_v37, 0.0 }
 0x363   : > { %v1537_v43 = vmax.f32 %v1462_v39, 0.0 }
 0x364   : > { %v1566_v44 = vpack.c.bf16 %v1536_v41, %v1534_v40 }
 0x365   : > { %v1567_v45 = vpack.c.bf16 %v1537_v43, %v1535_v42  ;;  %v1465_v46 = vpop.f32.mrb[20].mxu1 }
 0x366   : > { %v1466_v47 = vadd.f32 %v1465_v46, %v4900_v0  ;;  %v1467_v48 = vpop.f32.mrb[21].mxu1 }
 0x367   : > { %v1468_v49 = vadd.f32 %v1467_v48, %v4902_v31  ;;  %v1469_v50 = vpop.f32.mrb[22].mxu1  ;;  %1749 = vmatprep.mubr.bf16.mxu0 %v1567_v45 }
 0x368   : > { %v1470_v51 = vadd.f32 %v1469_v50, %v4900_v0  ;;  %v1471_v52 = vpop.f32.mrb[23].mxu1  ;;  %1750 = vmatmul.mubr.bf16.vlgmr.msra.gmra.mrb[16].mxu0 %v1566_v44  ;;  %v1538_v54 = vmax.f32 %v1466_v47, 0.0 }
 0x369   : > { %v1472_v53 = vadd.f32 %v1471_v52, %v4902_v31  ;;  %v1539_v56 = vmax.f32 %v1468_v49, 0.0 }
 0x36a   : > { %v1540_v55 = vmax.f32 %v1470_v51, 0.0 }
 0x36b   : > { %v1541_v57 = vmax.f32 %v1472_v53, 0.0 }
 0x36c   : > { %v1568_v58 = vpack.c.bf16 %v1540_v55, %v1538_v54 }
 0x36d   : > { %v1569_v59 = vpack.c.bf16 %v1541_v57, %v1539_v56  ;;  %v1475_v60 = vpop.f32.mrb[24].mxu1 }
 0x36e   : > { %v1476_v61 = vadd.f32 %v1475_v60, %v4900_v0  ;;  %v1477_v62 = vpop.f32.mrb[25].mxu1 }
 0x36f   : > { %v1478_v63 = vadd.f32 %v1477_v62, %v4902_v31  ;;  %v1479_v1 = vpop.f32.mrb[26].mxu1  ;;  %1757 = vmatprep.mubr.bf16.mxu0 %v1569_v59 }
 0x370   : > { %v1480_v2 = vadd.f32 %v1479_v1, %v4900_v0  ;;  %v1481_v3 = vpop.f32.mrb[27].mxu1  ;;  %1758 = vmatmul.mubr.bf16.gmra.mrb[20].mxu0 %v1568_v58  ;;  %v1542_v5 = vmax.f32 %v1476_v61, 0.0 }
 0x371   : > { %v1482_v4 = vadd.f32 %v1481_v3, %v4902_v31  ;;  %v1543_v7 = vmax.f32 %v1478_v63, 0.0 }
 0x372   : > { %v1544_v6 = vmax.f32 %v1480_v2, 0.0 }
 0x373   : > { %v1545_v8 = vmax.f32 %v1482_v4, 0.0 }
 0x374   : > { %v1570_v9 = vpack.c.bf16 %v1544_v6, %v1542_v5 }
 0x375   : > { %v1571_v10 = vpack.c.bf16 %v1545_v8, %v1543_v7  ;;  %v1485_v11 = vpop.f32.mrb[28].mxu1 }
 0x376   : > { %v1486_v12 = vadd.f32 %v1485_v11, %v4900_v0  ;;  %v1487_v13 = vpop.f32.mrb[29].mxu1 }
 0x377   : > { %v1488_v14 = vadd.f32 %v1487_v13, %v4902_v31  ;;  %v1489_v15 = vpop.f32.mrb[30].mxu1  ;;  %1765 = vmatprep.mubr.bf16.mxu0 %v1571_v10 }
 0x378   : > { %v1490_v16 = vadd.f32 %v1489_v15, %v4900_v0  ;;  %v1491_v17 = vpop.f32.mrb[31].mxu1  ;;  %1766 = vmatmul.mubr.bf16.gmra.mrb[24].mxu0 %v1570_v9  ;;  %v1546_v19 = vmax.f32 %v1486_v12, 0.0 }
 0x379   : > { %v1492_v18 = vadd.f32 %v1491_v17, %v4902_v31  ;;  %v1547_v21 = vmax.f32 %v1488_v14, 0.0 }
 0x37a   : > { %v1548_v20 = vmax.f32 %v1490_v16, 0.0 }
 0x37b   : > { %v1549_v22 = vmax.f32 %v1492_v18, 0.0 }
 0x37c   : > { %v1572_v23 = vpack.c.bf16 %v1548_v20, %v1546_v19 }
 0x37d   : > { %v1573_v24 = vpack.c.bf16 %v1549_v22, %v1547_v21  ;;  %v1495_v25 = vpop.f32.mrb[32].mxu1  ;;  %v4942_v22 = vld [vmem:[%s866_s11] ss:$0 sm:$0xff] }
 0x37e   : > { %v1496_v26 = vadd.f32 %v1495_v25, %v4900_v0  ;;  %v1497_v29 = vpop.f32.mrb[33].mxu1 }
 0x37f   : > { %v1498_v30 = vadd.f32 %v1497_v29, %v4902_v31  ;;  %v1499_v32 = vpop.f32.mrb[34].mxu1  ;;  %1773 = vmatprep.mubr.bf16.mxu0 %v1573_v24 }
 0x380   : > { %v1500_v33 = vadd.f32 %v1499_v32, %v4900_v0  ;;  %v1501_v34 = vpop.f32.mrb[35].mxu1  ;;  %1774 = vmatmul.mubr.bf16.gmra.mrb[28].mxu0 %v1572_v23  ;;  %v1550_v36 = vmax.f32 %v1496_v26, 0.0 }
 0x381   : > { %v1502_v35 = vadd.f32 %v1501_v34, %v4902_v31  ;;  %v1551_v38 = vmax.f32 %v1498_v30, 0.0 }
 0x382   : > { %v1552_v37 = vmax.f32 %v1500_v33, 0.0 }
 0x383   : > { %v1553_v39 = vmax.f32 %v1502_v35, 0.0 }
 0x384   : > { %v1574_v40 = vpack.c.bf16 %v1552_v37, %v1550_v36 }
 0x385   : > { %v1575_v41 = vpack.c.bf16 %v1553_v39, %v1551_v38  ;;  %v1505_v42 = vpop.f32.mrb[36].mxu1 }
 0x386   : > { %v1506_v43 = vadd.f32 %v1505_v42, %v4900_v0  ;;  %v1507_v44 = vpop.f32.mrb[37].mxu1 }
 0x387   : > { %v1508_v45 = vadd.f32 %v1507_v44, %v4902_v31  ;;  %v1509_v46 = vpop.f32.mrb[38].mxu1  ;;  %1781 = vmatprep.mubr.bf16.mxu0 %v1575_v41 }
 0x388   : > { %v1510_v47 = vadd.f32 %v1509_v46, %v4900_v0  ;;  %v1511_v48 = vpop.f32.mrb[39].mxu1  ;;  %1782 = vmatmul.mubr.bf16.gmra.mrb[32].mxu0 %v1574_v40  ;;  %v1554_v50 = vmax.f32 %v1506_v43, 0.0 }
 0x389   : > { %v1512_v49 = vadd.f32 %v1511_v48, %v4902_v31  ;;  %v1555_v52 = vmax.f32 %v1508_v45, 0.0 }
 0x38a   : > { %v1556_v51 = vmax.f32 %v1510_v47, 0.0 }
 0x38b   : > { %v1557_v53 = vmax.f32 %v1512_v49, 0.0 }
 0x38c   : > { %v1576_v54 = vpack.c.bf16 %v1556_v51, %v1554_v50 }
 0x38d   : > { %v1577_v55 = vpack.c.bf16 %v1557_v53, %v1555_v52  ;;  %v1515_v56 = vpop.f32.mrb[40].mxu1 }
 0x38e   : > { %v1516_v57 = vadd.f32 %v1515_v56, %v4900_v0  ;;  %v1517_v58 = vpop.f32.mrb[41].mxu1 }
 0x38f   : > { %v1518_v59 = vadd.f32 %v1517_v58, %v4902_v31  ;;  %v1519_v60 = vpop.f32.mrb[42].mxu1  ;;  %1789 = vmatprep.mubr.bf16.mxu0 %v1577_v55 }
 0x390   : > { %v1520_v61 = vadd.f32 %v1519_v60, %v4900_v0  ;;  %v1521_v62 = vpop.f32.mrb[43].mxu1  ;;  %1790 = vmatmul.mubr.bf16.gmra.mrb[36].mxu0 %v1576_v54  ;;  %v1558_v1 = vmax.f32 %v1516_v57, 0.0 }
 0x391   : > { %v1522_v63 = vadd.f32 %v1521_v62, %v4902_v31  ;;  %v1559_v3 = vmax.f32 %v1518_v59, 0.0 }
 0x392   : > { %v1560_v2 = vmax.f32 %v1520_v61, 0.0 }
 0x393   : > { %v1561_v4 = vmax.f32 %v1522_v63, 0.0 }
 0x394   : > { %v1578_v5 = vpack.c.bf16 %v1560_v2, %v1558_v1 }
 0x395   : > { %v1579_v6 = vpack.c.bf16 %v1561_v4, %v1559_v3  ;;  %v1525_v7 = vpop.f32.mrb[44].mxu1 }
 0x396   : > { %v1526_v8 = vadd.f32 %v1525_v7, %v4900_v0  ;;  %v1527_v9 = vpop.f32.mrb[45].mxu1 }
 0x397   : > { %v1528_v10 = vadd.f32 %v1527_v9, %v4902_v31  ;;  %v1529_v11 = vpop.f32.mrb[46].mxu1  ;;  %1797 = vmatprep.mubr.bf16.mxu0 %v1579_v6 }
 0x398   : > { %v1530_v12 = vadd.f32 %v1529_v11, %v4900_v0  ;;  %v1531_v13 = vpop.f32.mrb[47].mxu1  ;;  %1798 = vmatmul.mubr.bf16.gmra.mrb[40].mxu0 %v1578_v5  ;;  %v1562_v15 = vmax.f32 %v1526_v8, 0.0 }
 0x399   : > { %v1532_v14 = vadd.f32 %v1531_v13, %v4902_v31  ;;  %v1563_v17 = vmax.f32 %v1528_v10, 0.0 }
 0x39a   : > { %v1564_v16 = vmax.f32 %v1530_v12, 0.0 }
 0x39b   : > { %v1565_v18 = vmax.f32 %v1532_v14, 0.0 }
 0x39c   : > { %v1580_v19 = vpack.c.bf16 %v1564_v16, %v1562_v15 }
 0x39d   : > { %v1581_v20 = vpack.c.bf16 %v1565_v18, %v1563_v17 }
 0x39f   : > { %1805 = vmatprep.mubr.bf16.mxu0 %v1581_v20 }
 0x3a0   : > { %1806 = vmatmul.mubr.bf16.gmra.mrb[44].mxu0 %v1580_v19 }
 0x43b   : > { %v3172_v21 = vpop.f32.mrb[16].mxu0 }
 0x43c   : > { %v3173_v0 = vpop.f32.mrb[17].mxu0 }
 0x43d   : > { %v3174_v23 = vadd.f32 %v3173_v0, %v3172_v21  ;;  %v3175_v24 = vpop.f32.mrb[18].mxu0 }
 0x43e   : > { %v3176_v31 = vpop.f32.mrb[19].mxu0 }
 0x43f   : > { %v1752_v25 = vadd.f32 %v3174_v23, %v4942_v22  ;;  %v3177_v26 = vadd.f32 %v3176_v31, %v3175_v24 }
 0x441   : > { %1816 = vst [vmem:[%s4945_s10] sm:$0xff] %v1752_v25  ;;  %v1755_v29 = vadd.f32 %v3177_v26, %v4942_v22 }
 0x443   : > { %1817 = vst [vmem:[%s4945_s10 + $0x8] sm:$0xff] %v1755_v29  ;;  %v3178_v30 = vpop.f32.mrb[20].mxu0 }
 0x444   : > { %v3179_v32 = vpop.f32.mrb[21].mxu0 }
 0x445   : > { %v3180_v33 = vadd.f32 %v3179_v32, %v3178_v30  ;;  %v3181_v34 = vpop.f32.mrb[22].mxu0 }
 0x446   : > { %v3182_v35 = vpop.f32.mrb[23].mxu0 }
 0x447   : > { %v1760_v36 = vadd.f32 %v3180_v33, %v4942_v22  ;;  %v3183_v37 = vadd.f32 %v3182_v35, %v3181_v34 }
 0x449   : > { %1818 = vst [vmem:[%s4945_s10 + $0x10] sm:$0xff] %v1760_v36  ;;  %v1763_v38 = vadd.f32 %v3183_v37, %v4942_v22 }
 0x44b   : > { %1819 = vst [vmem:[%s4945_s10 + $0x18] sm:$0xff] %v1763_v38  ;;  %v3184_v39 = vpop.f32.mrb[24].mxu0 }
 0x44c   : > { %v3185_v40 = vpop.f32.mrb[25].mxu0 }
 0x44d   : > { %v3186_v41 = vadd.f32 %v3185_v40, %v3184_v39  ;;  %v3187_v42 = vpop.f32.mrb[26].mxu0 }
 0x44e   : > { %v3188_v43 = vpop.f32.mrb[27].mxu0 }
 0x44f   : > { %v1768_v44 = vadd.f32 %v3186_v41, %v4942_v22  ;;  %v3189_v45 = vadd.f32 %v3188_v43, %v3187_v42 }
 0x451   : > { %1820 = vst [vmem:[%s4945_s10 + $0x20] sm:$0xff] %v1768_v44  ;;  %v1771_v46 = vadd.f32 %v3189_v45, %v4942_v22 }
 0x453   : > { %1821 = vst [vmem:[%s4945_s10 + $0x28] sm:$0xff] %v1771_v46  ;;  %v3190_v47 = vpop.f32.mrb[28].mxu0 }
 0x454   : > { %v3191_v48 = vpop.f32.mrb[29].mxu0 }
 0x455   : > { %v3192_v49 = vadd.f32 %v3191_v48, %v3190_v47  ;;  %v3193_v50 = vpop.f32.mrb[30].mxu0 }
 0x456   : > { %v3194_v51 = vpop.f32.mrb[31].mxu0 }
 0x457   : > { %v1776_v52 = vadd.f32 %v3192_v49, %v4942_v22  ;;  %v3195_v53 = vadd.f32 %v3194_v51, %v3193_v50 }
 0x459   : > { %1822 = vst [vmem:[%s4945_s10 + $0x30] sm:$0xff] %v1776_v52  ;;  %v1779_v54 = vadd.f32 %v3195_v53, %v4942_v22 }
 0x45b   : > { %1823 = vst [vmem:[%s4945_s10 + $0x38] sm:$0xff] %v1779_v54  ;;  %v3196_v55 = vpop.f32.mrb[32].mxu0 }
 0x45c   : > { %v3197_v56 = vpop.f32.mrb[33].mxu0 }
 0x45d   : > { %v3198_v57 = vadd.f32 %v3197_v56, %v3196_v55  ;;  %v3199_v58 = vpop.f32.mrb[34].mxu0 }
 0x45e   : > { %v3200_v59 = vpop.f32.mrb[35].mxu0 }
 0x45f   : > { %v1784_v60 = vadd.f32 %v3198_v57, %v4942_v22  ;;  %v3201_v61 = vadd.f32 %v3200_v59, %v3199_v58 }
 0x461   : > { %1824 = vst [vmem:[%s4945_s10 + $0x40] sm:$0xff] %v1784_v60  ;;  %v1787_v62 = vadd.f32 %v3201_v61, %v4942_v22 }
 0x463   : > { %1825 = vst [vmem:[%s4945_s10 + $0x48] sm:$0xff] %v1787_v62  ;;  %v3202_v63 = vpop.f32.mrb[36].mxu0 }
 0x464   : > { %v3203_v1 = vpop.f32.mrb[37].mxu0 }
 0x465   : > { %v3204_v2 = vadd.f32 %v3203_v1, %v3202_v63  ;;  %v3205_v3 = vpop.f32.mrb[38].mxu0 }
 0x466   : > { %v3206_v4 = vpop.f32.mrb[39].mxu0 }
 0x467   : > { %v1792_v5 = vadd.f32 %v3204_v2, %v4942_v22  ;;  %v3207_v6 = vadd.f32 %v3206_v4, %v3205_v3 }
 0x469   : > { %1826 = vst [vmem:[%s4945_s10 + $0x50] sm:$0xff] %v1792_v5  ;;  %v1795_v7 = vadd.f32 %v3207_v6, %v4942_v22 }
 0x46b   : > { %1827 = vst [vmem:[%s4945_s10 + $0x58] sm:$0xff] %v1795_v7  ;;  %v3208_v8 = vpop.f32.mrb[40].mxu0 }
 0x46c   : > { %v3209_v9 = vpop.f32.mrb[41].mxu0 }
 0x46d   : > { %v3210_v10 = vadd.f32 %v3209_v9, %v3208_v8  ;;  %v3211_v11 = vpop.f32.mrb[42].mxu0 }
 0x46e   : > { %v3212_v12 = vpop.f32.mrb[43].mxu0 }
 0x46f   : > { %v1800_v13 = vadd.f32 %v3210_v10, %v4942_v22  ;;  %v3213_v14 = vadd.f32 %v3212_v12, %v3211_v11 }
 0x471   : > { %1828 = vst [vmem:[%s4945_s10 + $0x60] sm:$0xff] %v1800_v13  ;;  %v1803_v15 = vadd.f32 %v3213_v14, %v4942_v22 }
 0x473   : > { %1829 = vst [vmem:[%s4945_s10 + $0x68] sm:$0xff] %v1803_v15  ;;  %v3214_v16 = vpop.f32.mrb[44].mxu0 }
 0x474   : > { %v3215_v17 = vpop.f32.mrb[45].mxu0 }
 0x475   : > { %v3216_v18 = vadd.f32 %v3215_v17, %v3214_v16  ;;  %v3217_v19 = vpop.f32.mrb[46].mxu0  ;;  %1835 = sbr.rel (%p3040_p13) target bundleno = 2517 (0x9d5), region = 136 }
 0x476   : > { %v3218_v20 = vpop.f32.mrb[47].mxu0 }
 0x477   : > { %v1808_v21 = vadd.f32 %v3216_v18, %v4942_v22  ;;  %v3219_v0 = vadd.f32 %v3218_v20, %v3217_v19 }
 0x479   : > { %1830 = vst [vmem:[%s4945_s10 + $0x70] sm:$0xff] %v1808_v21  ;;  %v1811_v23 = vadd.f32 %v3219_v0, %v4942_v22 }
 0x47b   : > { %1831 = vst [vmem:[%s4945_s10 + $0x78] sm:$0xff] %v1811_v23 }
 0x482   : > { %v4979_v24 = vld [vmem:[#allocation3] sm:$0xff]  ;;  %v4981_v31 = vld [vmem:[#allocation3 + $0x8] sm:$0xff]  ;;  %v4983_v25 = vld [vmem:[#allocation3 + $0x10] sm:$0xff] }
 0x483   : > { %v1868_v26 = vadd.f32 %v4981_v31, %v4979_v24  ;;  %v4987_v29 = vld [vmem:[#allocation3 + $0x18] sm:$0xff]  ;;  %v4990_v32 = vld [vmem:[#allocation3 + $0x20] sm:$0xff]  ;;  %v4993_v33 = vld [vmem:[#allocation3 + $0x28] sm:$0xff] }
 0x484   : > { %v4996_v35 = vld [vmem:[#allocation3 + $0x30] sm:$0xff]  ;;  %v4999_v37 = vld [vmem:[#allocation3 + $0x38] sm:$0xff]  ;;  %v5002_v39 = vld [vmem:[#allocation3 + $0x40] sm:$0xff] }
 0x485   : > { %v1869_v30 = vadd.f32 %v1868_v26, %v4983_v25  ;;  %v5005_v41 = vld [vmem:[#allocation3 + $0x48] sm:$0xff]  ;;  %v5008_v43 = vld [vmem:[#allocation3 + $0x50] sm:$0xff]  ;;  %v5011_v45 = vld [vmem:[#allocation3 + $0x58] sm:$0xff] }
 0x486   : > { %v5014_v47 = vld [vmem:[#allocation3 + $0x60] sm:$0xff]  ;;  %v5017_v49 = vld [vmem:[#allocation3 + $0x68] sm:$0xff]  ;;  %v5020_v51 = vld [vmem:[#allocation3 + $0x70] sm:$0xff] }
 0x487   : > { %v1870_v22 = vadd.f32 %v1869_v30, %v4987_v29  ;;  %v5023_v53 = vld [vmem:[#allocation3 + $0x78] sm:$0xff]  ;;  %v5026_v55 = vld [vmem:[#allocation3 + $0x80] sm:$0xff]  ;;  %v5029_v57 = vld [vmem:[#allocation3 + $0x88] sm:$0xff] }
 0x488   : > { %v5032_v59 = vld [vmem:[#allocation3 + $0x90] sm:$0xff]  ;;  %v5035_v61 = vld [vmem:[#allocation3 + $0x98] sm:$0xff]  ;;  %v5038_v63 = vld [vmem:[#allocation3 + $0xa0] sm:$0xff] }
 0x489   : > { %v1871_v34 = vadd.f32 %v1870_v22, %v4990_v32  ;;  %v5041_v2 = vld [vmem:[#allocation3 + $0xa8] sm:$0xff]  ;;  %v5044_v4 = vld [vmem:[#allocation3 + $0xb0] sm:$0xff]  ;;  %v5047_v6 = vld [vmem:[#allocation3 + $0xb8] sm:$0xff] }
 0x48a   : > { %v5050_v8 = vld [vmem:[#allocation3 + $0xc0] sm:$0xff]  ;;  %v5053_v10 = vld [vmem:[#allocation3 + $0xc8] sm:$0xff]  ;;  %v5056_v12 = vld [vmem:[#allocation3 + $0xd0] sm:$0xff] }
 0x48b   : > { %v1872_v36 = vadd.f32 %v1871_v34, %v4993_v33  ;;  %v5059_v14 = vld [vmem:[#allocation3 + $0xd8] sm:$0xff]  ;;  %v5062_v16 = vld [vmem:[#allocation3 + $0xe0] sm:$0xff]  ;;  %v5065_v18 = vld [vmem:[#allocation3 + $0xe8] sm:$0xff] }
 0x48c   : > { %v5068_v20 = vld [vmem:[#allocation3 + $0xf0] sm:$0xff]  ;;  %v5071_v0 = vld [vmem:[#allocation3 + $0xf8] sm:$0xff] }
 0x48d   : > { %v1873_v38 = vadd.f32 %v1872_v36, %v4996_v35 }
 0x48f   : > { %v1874_v40 = vadd.f32 %v1873_v38, %v4999_v37 }
 0x491   : > { %v1875_v42 = vadd.f32 %v1874_v40, %v5002_v39 }
 0x493   : > { %v1876_v44 = vadd.f32 %v1875_v42, %v5005_v41 }
 0x495   : > { %v1877_v46 = vadd.f32 %v1876_v44, %v5008_v43 }
 0x497   : > { %v1878_v48 = vadd.f32 %v1877_v46, %v5011_v45 }
 0x499   : > { %v1879_v50 = vadd.f32 %v1878_v48, %v5014_v47 }
 0x49b   : > { %v1880_v52 = vadd.f32 %v1879_v50, %v5017_v49 }
 0x49d   : > { %v1881_v54 = vadd.f32 %v1880_v52, %v5020_v51 }
 0x49f   : > { %v1882_v56 = vadd.f32 %v1881_v54, %v5023_v53 }
 0x4a1   : > { %v1883_v58 = vadd.f32 %v1882_v56, %v5026_v55 }
 0x4a3   : > { %v1884_v60 = vadd.f32 %v1883_v58, %v5029_v57 }
 0x4a5   : > { %v1885_v62 = vadd.f32 %v1884_v60, %v5032_v59 }
 0x4a7   : > { %v1886_v1 = vadd.f32 %v1885_v62, %v5035_v61 }
 0x4a9   : > { %v1887_v3 = vadd.f32 %v1886_v1, %v5038_v63 }
 0x4ab   : > { %v1888_v5 = vadd.f32 %v1887_v3, %v5041_v2 }
 0x4ad   : > { %v1889_v7 = vadd.f32 %v1888_v5, %v5044_v4 }
 0x4af   : > { %v1890_v9 = vadd.f32 %v1889_v7, %v5047_v6 }
 0x4b1   : > { %v1891_v11 = vadd.f32 %v1890_v9, %v5050_v8 }
 0x4b3   : > { %v1892_v13 = vadd.f32 %v1891_v11, %v5053_v10 }
 0x4b5   : > { %v1893_v15 = vadd.f32 %v1892_v13, %v5056_v12 }
 0x4b7   : > { %v1894_v17 = vadd.f32 %v1893_v15, %v5059_v14 }
 0x4b9   : > { %v1895_v19 = vadd.f32 %v1894_v17, %v5062_v16 }
 0x4bb   : > { %v1896_v21 = vadd.f32 %v1895_v19, %v5065_v18 }
 0x4bd   : > { %v1897_v23 = vadd.f32 %v1896_v21, %v5068_v20 }
 0x4bf   : > { %v1898_v26 = vadd.f32 %v1897_v23, %v5071_v0 }
 0x4c1   : > { %v1899_v30 = vrot.slane %v1898_v26, 4 }
 0x4c3   : > { %v1900_v22 = vadd.f32 %v1899_v30, %v1898_v26 }
 0x4c5   : > { %v1901_v34 = vrot.slane %v1900_v22, 2 }
 0x4c7   : > { %v1902_v36 = vadd.f32 %v1901_v34, %v1900_v22 }
 0x4c9   : > { %v1903_v38 = vrot.slane %v1902_v36, 1 }
 0x4cb   : > { %v1904_v40 = vadd.f32 %v1903_v38, %v1902_v36 }
 0x4cd   : > { %v5075_v42 = vmul.f32 0.00390625, %v1904_v40 }
 0x4cf   : > { %v5079_v44 = vsub.f32 %v4979_v24, %v5075_v42  ;;  %v5083_v46 = vsub.f32 %v4981_v31, %v5075_v42  ;;  %v5087_v48 = vsub.f32 %v4983_v25, %v5075_v42  ;;  %v5091_v50 = vsub.f32 %v4987_v29, %v5075_v42 }
 0x4d0   : > { %v5099_v24 = vsub.f32 %v4990_v32, %v5075_v42  ;;  %v5105_v25 = vsub.f32 %v4993_v33, %v5075_v42  ;;  %v5111_v58 = vsub.f32 %v4996_v35, %v5075_v42  ;;  %v5117_v62 = vsub.f32 %v4999_v37, %v5075_v42 }
 0x4d1   : > { %v1938_v52 = vmul.f32 %v5079_v44, %v5079_v44  ;;  %v1939_v54 = vmul.f32 %v5083_v46, %v5083_v46  ;;  %v1940_v31 = vmul.f32 %v5087_v48, %v5087_v48  ;;  %v1941_v29 = vmul.f32 %v5091_v50, %v5091_v50 }
 0x4d2   : > { %v1942_v60 = vmul.f32 %v5099_v24, %v5099_v24  ;;  %v1943_v33 = vmul.f32 %v5105_v25, %v5105_v25  ;;  %v5123_v3 = vsub.f32 %v5002_v39, %v5075_v42  ;;  %v1944_v35 = vmul.f32 %v5111_v58, %v5111_v58 }
 0x4d3   : > { %v1970_v56 = vadd.f32 %v1939_v54, %v1938_v52  ;;  %v5129_v7 = vsub.f32 %v5005_v41, %v5075_v42  ;;  %v1945_v37 = vmul.f32 %v5117_v62, %v5117_v62  ;;  %v5135_v11 = vsub.f32 %v5008_v43, %v5075_v42 }
 0x4d4   : > { %v1946_v39 = vmul.f32 %v5123_v3, %v5123_v3  ;;  %v5141_v15 = vsub.f32 %v5011_v45, %v5075_v42  ;;  %v5147_v19 = vsub.f32 %v5014_v47, %v5075_v42  ;;  %v5153_v23 = vsub.f32 %v5017_v49, %v5075_v42 }
 0x4d5   : > { %v1971_v32 = vadd.f32 %v1970_v56, %v1940_v31  ;;  %v1947_v41 = vmul.f32 %v5129_v7, %v5129_v7  ;;  %v1948_v43 = vmul.f32 %v5135_v11, %v5135_v11  ;;  %v5159_v30 = vsub.f32 %v5020_v51, %v5075_v42 }
 0x4d6   : > { %v1949_v45 = vmul.f32 %v5141_v15, %v5141_v15  ;;  %v1950_v47 = vmul.f32 %v5147_v19, %v5147_v19  ;;  %v5165_v34 = vsub.f32 %v5023_v53, %v5075_v42  ;;  %v1951_v49 = vmul.f32 %v5153_v23, %v5153_v23 }
 0x4d7   : > { %v1972_v1 = vadd.f32 %v1971_v32, %v1941_v29  ;;  %v5171_v38 = vsub.f32 %v5026_v55, %v5075_v42  ;;  %v1952_v51 = vmul.f32 %v5159_v30, %v5159_v30  ;;  %v5177_v52 = vsub.f32 %v5029_v57, %v5075_v42 }
 0x4d8   : > { %v1953_v53 = vmul.f32 %v5165_v34, %v5165_v34  ;;  %v5183_v31 = vsub.f32 %v5032_v59, %v5075_v42  ;;  %v5189_v56 = vsub.f32 %v5035_v61, %v5075_v42  ;;  %v5195_v32 = vsub.f32 %v5038_v63, %v5075_v42 }
 0x4d9   : > { %v1973_v5 = vadd.f32 %v1972_v1, %v1942_v60  ;;  %v1954_v55 = vmul.f32 %v5171_v38, %v5171_v38  ;;  %v1955_v57 = vmul.f32 %v5177_v52, %v5177_v52  ;;  %v5201_v1 = vsub.f32 %v5041_v2, %v5075_v42 }
 0x4da   : > { %v1956_v59 = vmul.f32 %v5183_v31, %v5183_v31  ;;  %v1957_v61 = vmul.f32 %v5189_v56, %v5189_v56  ;;  %v1958_v63 = vmul.f32 %v5195_v32, %v5195_v32 }
 0x4db   : > { %v1974_v9 = vadd.f32 %v1973_v5, %v1943_v33  ;;  %v5207_v5 = vsub.f32 %v5044_v4, %v5075_v42  ;;  %v1959_v2 = vmul.f32 %v5201_v1, %v5201_v1 }
 0x4dd   : > { %v1975_v13 = vadd.f32 %v1974_v9, %v1944_v35  ;;  %v5213_v9 = vsub.f32 %v5047_v6, %v5075_v42  ;;  %v1960_v4 = vmul.f32 %v5207_v5, %v5207_v5 }
 0x4df   : > { %v1976_v17 = vadd.f32 %v1975_v13, %v1945_v37  ;;  %v5219_v13 = vsub.f32 %v5050_v8, %v5075_v42  ;;  %v1961_v6 = vmul.f32 %v5213_v9, %v5213_v9 }
 0x4e1   : > { %v1977_v21 = vadd.f32 %v1976_v17, %v1946_v39  ;;  %v5225_v17 = vsub.f32 %v5053_v10, %v5075_v42  ;;  %v1962_v8 = vmul.f32 %v5219_v13, %v5219_v13 }
 0x4e3   : > { %v1978_v26 = vadd.f32 %v1977_v21, %v1947_v41  ;;  %v5231_v21 = vsub.f32 %v5056_v12, %v5075_v42  ;;  %v1935_v12 = vsub.f32 %v5065_v18, %v5075_v42 }
 0x4e5   : > { %v1979_v22 = vadd.f32 %v1978_v26, %v1948_v43  ;;  %v1933_v26 = vsub.f32 %v5059_v14, %v5075_v42 }
 0x4e7   : > { %v1980_v36 = vadd.f32 %v1979_v22, %v1949_v45  ;;  %v1934_v22 = vsub.f32 %v5062_v16, %v5075_v42 }
 0x4e9   : > { %v1981_v40 = vadd.f32 %v1980_v36, %v1950_v47  ;;  %v1963_v47 = vmul.f32 %v5225_v17, %v5225_v17  ;;  %v1966_v14 = vmul.f32 %v1934_v22, %v1934_v22 }
 0x4eb   : > { %v1982_v54 = vadd.f32 %v1981_v40, %v1951_v49  ;;  %v1964_v49 = vmul.f32 %v5231_v21, %v5231_v21 }
 0x4ed   : > { %v1983_v29 = vadd.f32 %v1982_v54, %v1952_v51  ;;  %v1965_v51 = vmul.f32 %v1933_v26, %v1933_v26 }
 0x4ef   : > { %v1984_v60 = vadd.f32 %v1983_v29, %v1953_v53  ;;  %v1936_v53 = vsub.f32 %v5068_v20, %v5075_v42  ;;  %v1967_v29 = vmul.f32 %v1935_v12, %v1935_v12 }
 0x4f1   : > { %v1985_v33 = vadd.f32 %v1984_v60, %v1954_v55  ;;  %v1937_v55 = vsub.f32 %v5071_v0, %v5075_v42  ;;  %v1968_v16 = vmul.f32 %v1936_v53, %v1936_v53  ;;  %v2008_v0 = vld [vmem:[%s869_s2] sm:$0x1] }
 0x4f3   : > { %v1986_v35 = vadd.f32 %v1985_v33, %v1955_v57 }
 0x4f5   : > { %v1987_v37 = vadd.f32 %v1986_v35, %v1956_v59  ;;  %v1969_v59 = vmul.f32 %v1937_v55, %v1937_v55 }
 0x4f7   : > { %v1988_v39 = vadd.f32 %v1987_v37, %v1957_v61 }
 0x4f9   : > { %v1989_v41 = vadd.f32 %v1988_v39, %v1958_v63 }
 0x4fb   : > { %v1990_v43 = vadd.f32 %v1989_v41, %v1959_v2 }
 0x4fd   : > { %v1991_v45 = vadd.f32 %v1990_v43, %v1960_v4 }
 0x4ff   : > { %v1992_v10 = vadd.f32 %v1991_v45, %v1961_v6 }
 0x501   : > { %v1993_v36 = vadd.f32 %v1992_v10, %v1962_v8 }
 0x503   : > { %v1994_v40 = vadd.f32 %v1993_v36, %v1963_v47 }
 0x505   : > { %v1995_v54 = vadd.f32 %v1994_v40, %v1964_v49 }
 0x507   : > { %v1996_v57 = vadd.f32 %v1995_v54, %v1965_v51 }
 0x509   : > { %v1997_v60 = vadd.f32 %v1996_v57, %v1966_v14 }
 0x50b   : > { %v1998_v33 = vadd.f32 %v1997_v60, %v1967_v29 }
 0x50d   : > { %v1999_v61 = vadd.f32 %v1998_v33, %v1968_v16 }
 0x50f   : > { %v2000_v35 = vadd.f32 %v1999_v61, %v1969_v59 }
 0x511   : > { %v2001_v18 = vrot.slane %v2000_v35, 4 }
 0x513   : > { %v2002_v63 = vadd.f32 %v2001_v18, %v2000_v35 }
 0x515   : > { %v2003_v37 = vrot.slane %v2002_v63, 2 }
 0x517   : > { %v2004_v2 = vadd.f32 %v2003_v37, %v2002_v63 }
 0x519   : > { %v2005_v39 = vrot.slane %v2004_v2, 1 }
 0x51b   : > { %v2006_v20 = vadd.f32 %v2005_v39, %v2004_v2 }
 0x51d   : > { %v2007_v4 = vmul.f32 0.00390625, %v2006_v20 }
 0x51f   : > { %v2009_v41 = vadd.f32 1e-05, %v2007_v4 }
 0x521   : > { %3668 = vrsqrt.f32 %v2009_v41 }
 0x52b   : > { %v3669_v42 = vpop.eup %3668 }
 0x52c   : > { %v2011_v6 = vmul.f32 %v3669_v42, %v2008_v0 }
 0x52e   : > { %v2016_v43 = vrot.slane %v2011_v6, %v1333_v28 }
 0x530   : > { %v2018_v8 = vmul.f32 %v2016_v43, %v5079_v44  ;;  %v2019_v45 = vmul.f32 %v2016_v43, %v5083_v46  ;;  %v2020_v47 = vmul.f32 %v2016_v43, %v5087_v48  ;;  %v2021_v10 = vmul.f32 %v2016_v43, %v5091_v50 }
 0x531   : > { %v2022_v49 = vmul.f32 %v2016_v43, %v5099_v24  ;;  %v2023_v36 = vmul.f32 %v2016_v43, %v5105_v25  ;;  %v2024_v51 = vmul.f32 %v2016_v43, %v5111_v58  ;;  %v2025_v40 = vmul.f32 %v2016_v43, %v5117_v62 }
 0x532   : > { %v2026_v14 = vmul.f32 %v2016_v43, %v5123_v3  ;;  %v2027_v27 = vmul.f32 %v2016_v43, %v5129_v7  ;;  %v2028_v28 = vmul.f32 %v2016_v43, %v5135_v11  ;;  %v2029_v44 = vmul.f32 %v2016_v43, %v5141_v15 }
 0x533   : > { %v2030_v46 = vmul.f32 %v2016_v43, %v5147_v19  ;;  %v2031_v48 = vmul.f32 %v2016_v43, %v5153_v23  ;;  %v2032_v50 = vmul.f32 %v2016_v43, %v5159_v30  ;;  %v2033_v24 = vmul.f32 %v2016_v43, %v5165_v34  ;;  %v3041_v23 = vld [vmem:[%s872_s5] ss:$0 sm:$0xff]  ;;  %s5738_s5 = sld [smem:[#allocation37_spill]] }
 0x534   : > { %v2034_v25 = vmul.f32 %v2016_v43, %v5171_v38  ;;  %v2035_v58 = vmul.f32 %v2016_v43, %v5177_v52  ;;  %v2036_v62 = vmul.f32 %v2016_v43, %v5183_v31  ;;  %v2037_v3 = vmul.f32 %v2016_v43, %v5189_v56 }
 0x535   : > { %v2038_v7 = vmul.f32 %v2016_v43, %v5195_v32  ;;  %v2039_v11 = vmul.f32 %v2016_v43, %v5201_v1  ;;  %v2040_v15 = vmul.f32 %v2016_v43, %v5207_v5  ;;  %v2041_v19 = vmul.f32 %v2016_v43, %v5213_v9 }
 0x536   : > { %v2042_v30 = vmul.f32 %v2016_v43, %v5219_v13  ;;  %v2043_v34 = vmul.f32 %v2016_v43, %v5225_v17  ;;  %v2044_v38 = vmul.f32 %v2016_v43, %v5231_v21  ;;  %v2045_v52 = vmul.f32 %v2016_v43, %v1933_v26 }
 0x537   : > { %v2046_v31 = vmul.f32 %v2016_v43, %v1934_v22  ;;  %v2047_v56 = vmul.f32 %v2016_v43, %v1935_v12  ;;  %v2048_v32 = vmul.f32 %v2016_v43, %v1936_v53  ;;  %v2049_v1 = vmul.f32 %v2016_v43, %v1937_v55 }
 0x538   : > { %v5288_v54 = vadd.f32 %v3041_v23, %v2018_v8  ;;  %v5290_v5 = vadd.f32 %v3041_v23, %v2019_v45  ;;  %v5292_v9 = vadd.f32 %v3041_v23, %v2020_v47  ;;  %v5294_v29 = vadd.f32 %v3041_v23, %v2021_v10 }
 0x539   : > { %v5296_v57 = vadd.f32 %v3041_v23, %v2022_v49  ;;  %v5298_v13 = vadd.f32 %v3041_v23, %v2023_v36  ;;  %v5300_v17 = vadd.f32 %v3041_v23, %v2024_v51  ;;  %v5302_v21 = vadd.f32 %v3041_v23, %v2025_v40  ;;  %p3042_p4 = scmp.eq.s32.totalorder %s5738_s5, 2 }
 0x53a   : > { %v5304_v26 = vadd.f32 %v3041_v23, %v2026_v14  ;;  %v5306_v22 = vadd.f32 %v3041_v23, %v2027_v27  ;;  %v5308_v12 = vadd.f32 %v3041_v23, %v2028_v28  ;;  %v5310_v53 = vadd.f32 %v3041_v23, %v2029_v44 }
 0x53b   : > { %v5312_v55 = vadd.f32 %v3041_v23, %v2030_v46  ;;  %v5314_v16 = vadd.f32 %v3041_v23, %v2031_v48  ;;  %v5316_v60 = vadd.f32 %v3041_v23, %v2032_v50  ;;  %v5318_v59 = vadd.f32 %v3041_v23, %v2033_v24  ;;  %2093 = sbr.rel (%p3042_p4) target bundleno = 1360 (0x550), region = 140 }
 0x53c   : > { %v5320_v33 = vadd.f32 %v3041_v23, %v2034_v25  ;;  %v5322_v61 = vadd.f32 %v3041_v23, %v2035_v58  ;;  %v5324_v35 = vadd.f32 %v3041_v23, %v2036_v62  ;;  %v5326_v18 = vadd.f32 %v3041_v23, %v2037_v3 }
 0x53d   : > { %v5328_v63 = vadd.f32 %v3041_v23, %v2038_v7  ;;  %v5330_v37 = vadd.f32 %v3041_v23, %v2039_v11  ;;  %v5332_v2 = vadd.f32 %v3041_v23, %v2040_v15  ;;  %v5334_v39 = vadd.f32 %v3041_v23, %v2041_v19 }
 0x53e   : > { %v5336_v20 = vadd.f32 %v3041_v23, %v2042_v30  ;;  %v5338_v4 = vadd.f32 %v3041_v23, %v2043_v34  ;;  %v5340_v41 = vadd.f32 %v3041_v23, %v2044_v38  ;;  %v5342_v0 = vadd.f32 %v3041_v23, %v2045_v52 }
 0x53f   : > { %v5344_v42 = vadd.f32 %v3041_v23, %v2046_v31  ;;  %v5346_v6 = vadd.f32 %v3041_v23, %v2047_v56  ;;  %v5348_v43 = vadd.f32 %v3041_v23, %v2048_v32  ;;  %v5350_v8 = vadd.f32 %v3041_v23, %v2049_v1 }
 0x540   : > { %v2094_v45 = vmax.f32 (!%p3042_p4), %v5288_v54, 0.0  ;;  %v2095_v47 = vmax.f32 (!%p3042_p4), %v5290_v5, 0.0  ;;  %v2096_v10 = vmax.f32 (!%p3042_p4), %v5292_v9, 0.0  ;;  %v2097_v49 = vmax.f32 (!%p3042_p4), %v5294_v29, 0.0 }
 0x541   : > { %v2098_v36 = vmax.f32 (!%p3042_p4), %v5296_v57, 0.0  ;;  %v2099_v51 = vmax.f32 (!%p3042_p4), %v5298_v13, 0.0  ;;  %v2100_v40 = vmax.f32 (!%p3042_p4), %v5300_v17, 0.0  ;;  %v2101_v14 = vmax.f32 (!%p3042_p4), %v5302_v21, 0.0 }
 0x542   : > { %v2126_v27 = vpack.c.bf16 %v2095_v47, %v2094_v45  ;;  %v2127_v28 = vpack.c.bf16 %v2097_v49, %v2096_v10  ;;  %v2102_v44 = vmax.f32 %v5304_v26, 0.0  ;;  %v2103_v46 = vmax.f32 %v5306_v22, 0.0 }
 0x543   : > { %v2128_v48 = vpack.c.bf16 %v2099_v51, %v2098_v36  ;;  %v2129_v50 = vpack.c.bf16 %v2101_v14, %v2100_v40  ;;  %v2104_v24 = vmax.f32 %v5308_v12, 0.0  ;;  %v2105_v25 = vmax.f32 %v5310_v53, 0.0 }
 0x544   : > { %2142 = vst [vmem:[#allocation2] sm:$0xff] %v2126_v27  ;;  %2143 = vst [vmem:[#allocation2 + $0x8] sm:$0xff] %v2127_v28  ;;  %v2130_v58 = vpack.c.bf16 %v2103_v46, %v2102_v44  ;;  %v2106_v62 = vmax.f32 %v5312_v55, 0.0  ;;  %v2107_v3 = vmax.f32 %v5314_v16, 0.0  ;;  %v2108_v7 = vmax.f32 %v5316_v60, 0.0 }
 0x545   : > { %2144 = vst [vmem:[#allocation2 + $0x10] sm:$0xff] %v2128_v48  ;;  %2145 = vst [vmem:[#allocation2 + $0x18] sm:$0xff] %v2129_v50  ;;  %v2131_v11 = vpack.c.bf16 %v2105_v25, %v2104_v24  ;;  %v2109_v15 = vmax.f32 %v5318_v59, 0.0  ;;  %v2110_v19 = vmax.f32 %v5320_v33, 0.0  ;;  %v2111_v23 = vmax.f32 %v5322_v61, 0.0 }
 0x546   : > { %2146 = vst [vmem:[#allocation2 + $0x20] sm:$0xff] %v2130_v58  ;;  %v2132_v30 = vpack.c.bf16 %v2107_v3, %v2106_v62  ;;  %v2112_v34 = vmax.f32 %v5324_v35, 0.0  ;;  %v2113_v38 = vmax.f32 %v5326_v18, 0.0  ;;  %v2114_v52 = vmax.f32 %v5328_v63, 0.0 }
 0x547   : > { %2147 = vst [vmem:[#allocation2 + $0x28] sm:$0xff] %v2131_v11  ;;  %v2133_v31 = vpack.c.bf16 %v2109_v15, %v2108_v7  ;;  %v2134_v56 = vpack.c.bf16 %v2111_v23, %v2110_v19  ;;  %v2115_v32 = vmax.f32 %v5330_v37, 0.0  ;;  %v2116_v1 = vmax.f32 %v5332_v2, 0.0 }
 0x548   : > { %2148 = vst [vmem:[#allocation2 + $0x30] sm:$0xff] %v2132_v30  ;;  %v2135_v45 = vpack.c.bf16 %v2113_v38, %v2112_v34  ;;  %v2117_v47 = vmax.f32 %v5334_v39, 0.0  ;;  %v2118_v10 = vmax.f32 %v5336_v20, 0.0  ;;  %v2119_v49 = vmax.f32 %v5338_v4, 0.0 }
 0x549   : > { %2149 = vst [vmem:[#allocation2 + $0x38] sm:$0xff] %v2133_v31  ;;  %2150 = vst [vmem:[#allocation2 + $0x40] sm:$0xff] %v2134_v56  ;;  %v2136_v36 = vpack.c.bf16 %v2115_v32, %v2114_v52  ;;  %v2120_v51 = vmax.f32 %v5340_v41, 0.0  ;;  %v2121_v40 = vmax.f32 %v5342_v0, 0.0  ;;  %v2122_v14 = vmax.f32 %v5344_v42, 0.0 }
 0x54a   : > { %2151 = vst [vmem:[#allocation2 + $0x48] sm:$0xff] %v2135_v45  ;;  %v2137_v27 = vpack.c.bf16 %v2117_v47, %v2116_v1  ;;  %v2138_v28 = vpack.c.bf16 %v2119_v49, %v2118_v10  ;;  %v2123_v44 = vmax.f32 %v5346_v6, 0.0  ;;  %v2124_v46 = vmax.f32 %v5348_v43, 0.0 }
 0x54b   : > { %2152 = vst [vmem:[#allocation2 + $0x50] sm:$0xff] %v2136_v36  ;;  %v2139_v48 = vpack.c.bf16 %v2121_v40, %v2120_v51  ;;  %v2125_v50 = vmax.f32 %v5350_v8, 0.0 }
 0x54c   : > { %2153 = vst [vmem:[#allocation2 + $0x58] sm:$0xff] %v2137_v27  ;;  %2154 = vst [vmem:[#allocation2 + $0x60] sm:$0xff] %v2138_v28  ;;  %v2140_v24 = vpack.c.bf16 %v2123_v44, %v2122_v14 }
 0x54d   : > { %2155 = vst [vmem:[#allocation2 + $0x68] sm:$0xff] %v2139_v48  ;;  %v2141_v25 = vpack.c.bf16 %v2125_v50, %v2124_v46 }
 0x54e   : > { %2156 = vst [vmem:[#allocation2 + $0x70] sm:$0xff] %v2140_v24 }
 0x54f   : > { %2157 = vst [vmem:[#allocation2 + $0x78] sm:$0xff] %v2141_v25 }
 0x550 PF: > { %s5739_s21 = sld [smem:[#allocation37_spill]] }
 0x556   : > { %p3043_p9 = scmp.ne.s32.totalorder %s5739_s21, 2 }
 0x557   : > { %v2170_v58 = vpack.c.bf16 (!%p3043_p9), %v5322_v61, %v5320_v33  ;;  %v2162_v62 = vpack.c.bf16 (!%p3043_p9), %v5290_v5, %v5288_v54  ;;  %v2171_v3 = vpack.c.bf16 (!%p3043_p9), %v5326_v18, %v5324_v35  ;;  %s5740_s18 = sld [smem:[#allocation54_spill]] (!%p3043_p9)  ;;  %v3672_v11 = vld [vmem:[#allocation13] sm:$0xff] (!%p3043_p9)   ;;  %v2163_v15 = vpack.c.bf16 (!%p3043_p9), %v5294_v29, %v5292_v9  ;;  %v3673_v54 = vld [vmem:[#allocation13 + $0x8] sm:$0xff] (!%p3043_p9)   ;;  %v3674_v29 = vld [vmem:[#allocation13 + $0x10] sm:$0xff] (!%p3043_p9)   ;;  %s5741_s30 = sld [smem:[#allocation56_spill]] (!%p3043_p9) }
 0x558   : > { %2160 = sbr.rel (%p3043_p9) target bundleno = 2517 (0x9d5), region = 144  ;;  %v2172_v33 = vpack.c.bf16 (!%p3043_p9), %v5330_v37, %v5328_v63  ;;  %v4178_v19 = vmov (!%p3043_p9), 0.0   ;;  %v2164_v5 = vpack.c.bf16 (!%p3043_p9), %v5298_v13, %v5296_v57  ;;  %v2173_v9 = vpack.c.bf16 (!%p3043_p9), %v5334_v39, %v5332_v2  ;;  %v3675_v63 = vld [vmem:[#allocation13 + $0x18] sm:$0xff] (!%p3043_p9)   ;;  %v3676_v37 = vld [vmem:[#allocation13 + $0x20] sm:$0xff] (!%p3043_p9)   ;;  %v3677_v2 = vld [vmem:[#allocation13 + $0x28] sm:$0xff] (!%p3043_p9)   ;;  %s5742_s17 = sld [smem:[#allocation58_spill]] (!%p3043_p9) }
 0x559   : > { %3220 = vmatprep.subr.bf16.mxu0 (!%p3043_p9), %v2170_v58  ;;  %3278 = vmatprep.subr.bf16.mxu1 (!%p3043_p9), %v4178_v19  ;;  %v2165_v35 = vpack.c.bf16 (!%p3043_p9), %v5302_v21, %v5300_v17  ;;  %v2174_v18 = vpack.c.bf16 (!%p3043_p9), %v5338_v4, %v5336_v20  ;;  %v2166_v57 = vpack.c.bf16 (!%p3043_p9), %v5306_v22, %v5304_v26  ;;  %vm4179_vm0 = vmmov (!%p3043_p9), 0   ;;  %v3683_v20 = vld [vmem:[#allocation15 + $0x18] sm:$0xff] (!%p3043_p9)   ;;  %v3684_v4 = vld [vmem:[#allocation15 + $0x20] sm:$0xff] (!%p3043_p9)   ;;  %v3686_v30 = vld [vmem:[#allocation15 + $0x30] sm:$0xff] (!%p3043_p9)   ;;  %s5743_s13 = sld [smem:[#allocation60_spill]] (!%p3043_p9)  ;;  %s5744_s23 = sld [smem:[#allocation61_spill]] (!%p3043_p9) }
 0x55a   : > { %3221 = vmatpush3.bf16.msra.mxu0 (!%p3043_p9), %v2162_v62  ;;  %3279 = vmatpush3.bf16.msra.mxu1 (!%p3043_p9), %v3672_v11  ;;  %v2175_v13 = vpack.c.bf16 (!%p3043_p9), %v5342_v0, %v5340_v41  ;;  %v2167_v17 = vpack.c.bf16 (!%p3043_p9), %v5310_v53, %v5308_v12  ;;  %v2176_v21 = vpack.c.bf16 (!%p3043_p9), %v5346_v6, %v5344_v42  ;;  %v3678_v12 = vld [vmem:[#allocation13 + $0x30] sm:$0xff] (!%p3043_p9)   ;;  %v3685_v41 = vld [vmem:[#allocation15 + $0x28] sm:$0xff] (!%p3043_p9)   ;;  %v3687_v34 = vld [vmem:[#allocation15 + $0x38] sm:$0xff] (!%p3043_p9)  }
 0x55b   : > { %3222 = vmatprep.subr.bf16.mxu0 (!%p3043_p9), %v2171_v3  ;;  %3280 = vmatprep.subr.bf16.mxu1 (!%p3043_p9), %v4178_v19  ;;  %v2168_v26 = vpack.c.bf16 (!%p3043_p9), %v5314_v16, %v5312_v55  ;;  %v2177_v22 = vpack.c.bf16 (!%p3043_p9), %v5350_v8, %v5348_v43  ;;  %v2169_v53 = vpack.c.bf16 (!%p3043_p9), %v5318_v59, %v5316_v60  ;;  %v3679_v55 = vld [vmem:[#allocation13 + $0x38] sm:$0xff] (!%p3043_p9)   ;;  %v3680_v16 = vld [vmem:[#allocation15] sm:$0xff] (!%p3043_p9)   ;;  %v3681_v60 = vld [vmem:[#allocation15 + $0x8] sm:$0xff] (!%p3043_p9)  }
 0x55c   : > { %3294 = vmatprep.mubr.msk.bf16.mxu1 (!%p3043_p9), %vm4179_vm0, %v4178_v19  ;;  %v3682_v59 = vld [vmem:[#allocation15 + $0x10] sm:$0xff] (!%p3043_p9)   ;;  %v3688_v38 = vld [vmem:[#allocation16] sm:$0xff] (!%p3043_p9)   ;;  %v3689_v52 = vld [vmem:[#allocation16 + $0x8] sm:$0xff] (!%p3043_p9)  }
 0x55d   : > { %v2161_v7 = vld [vmem:[%s5740_s18] sm:$0xff] (!%p3043_p9)  ;;  %v3690_v31 = vld [vmem:[#allocation16 + $0x10] sm:$0xff] (!%p3043_p9)   ;;  %v3691_v56 = vld [vmem:[#allocation16 + $0x18] sm:$0xff] (!%p3043_p9)  }
 0x55e   : > { %v3045_v61 = vcombine.high (!%p3043_p9), %v2161_v7, %v2161_v7  ;;  %3223 = vmatpush3.bf16.msra.mxu0 (!%p3043_p9), %v2163_v15  ;;  %3281 = vmatpush3.bf16.msra.mxu1 (!%p3043_p9), %v3673_v54  ;;  %v3044_v39 = vcombine.low (!%p3043_p9), %v2161_v7, %v2161_v7  ;;  %v3692_v32 = vld [vmem:[#allocation16 + $0x20] sm:$0xff] (!%p3043_p9)   ;;  %v3693_v1 = vld [vmem:[#allocation16 + $0x28] sm:$0xff] (!%p3043_p9)   ;;  %v3694_v45 = vld [vmem:[#allocation16 + $0x30] sm:$0xff] (!%p3043_p9)  }
 0x55f   : > { %3224 = vmatprep.subr.bf16.mxu0 %v2172_v33  ;;  %3282 = vmatprep.subr.bf16.mxu1 %v4178_v19  ;;  %v3046_v47 = vld [vmem:[%s5741_s30] ss:$0 sm:$0xff]  ;;  %v3695_v28 = vld [vmem:[#allocation16 + $0x38] sm:$0xff]   ;;  %v3697_v3 = vld [vmem:[#allocation18 + $0x8] sm:$0xff]  }
 0x560   : > { %2217 = vmatprep.mubr.bf16.mxu0 %v3045_v61  ;;  %v3055_v44 = vld [vmem:[%s5742_s17] ss:$0 sm:$0xff]  ;;  %v3698_v7 = vld [vmem:[#allocation18 + $0x10] sm:$0xff]   ;;  %v3699_v11 = vld [vmem:[#allocation18 + $0x18] sm:$0xff]  }
 0x561   : > { %v3696_v62 = vld [vmem:[#allocation18] sm:$0xff]   ;;  %v3701_v33 = vld [vmem:[#allocation18 + $0x28] sm:$0xff]   ;;  %v3702_v61 = vld [vmem:[#allocation18 + $0x30] sm:$0xff]  }
 0x562   : > { %3225 = vmatpush3.bf16.msra.mxu0 %v2164_v5  ;;  %3283 = vmatpush3.bf16.msra.mxu1 %v3674_v29  ;;  %v3700_v15 = vld [vmem:[#allocation18 + $0x20] sm:$0xff]   ;;  %v3703_v54 = vld [vmem:[#allocation18 + $0x38] sm:$0xff]  }
 0x563   : > { %3226 = vmatprep.subr.bf16.mxu0 %v2173_v9  ;;  %3284 = vmatprep.subr.bf16.mxu1 %v4178_v19  ;;  %v3064_v5 = vld [vmem:[%s5743_s13] ss:$0 sm:$0xff] }
 0x566   : > { %3227 = vmatpush3.bf16.msra.mxu0 %v2165_v35  ;;  %3285 = vmatpush3.bf16.msra.mxu1 %v3675_v63 }
 0x567   : > { %3228 = vmatprep.subr.bf16.mxu0 %v2174_v18  ;;  %3286 = vmatprep.subr.bf16.mxu1 %v4178_v19 }
 0x56a   : > { %3229 = vmatpush3.bf16.msra.mxu0 %v2166_v57  ;;  %3287 = vmatpush3.bf16.msra.mxu1 %v3676_v37 }
 0x56b   : > { %3230 = vmatprep.subr.bf16.mxu0 %v2175_v13  ;;  %3288 = vmatprep.subr.bf16.mxu1 %v4178_v19 }
 0x56e   : > { %3231 = vmatpush3.bf16.msra.mxu0 %v2167_v17  ;;  %3289 = vmatpush3.bf16.msra.mxu1 %v3677_v2 }
 0x56f   : > { %3232 = vmatprep.subr.bf16.mxu0 %v2176_v21  ;;  %3290 = vmatprep.subr.bf16.mxu1 %v4178_v19 }
 0x572   : > { %3233 = vmatpush3.bf16.msra.mxu0 %v2168_v26  ;;  %3291 = vmatpush3.bf16.msra.mxu1 %v3678_v12 }
 0x573   : > { %3234 = vmatprep.subr.bf16.mxu0 %v2177_v22  ;;  %3292 = vmatprep.subr.bf16.mxu1 %v4178_v19 }
 0x576   : > { %3235 = vmatpush3.bf16.msra.mxu0 %v2169_v53  ;;  %3293 = vmatpush3.bf16.msra.mxu1 %v3679_v55  ;;  %v3073_v53 = vld [vmem:[%s5744_s23] ss:$0 sm:$0xff] }
 0x577   : > { %3298 = vmatprep.subr.bf16.mxu0 %v4178_v19  ;;  %3318 = vmatprep.subr.bf16.mxu1 %v4178_v19 }
 0x579   : > { %2218 = vmatmul.mubr.bf16.vlgmr.msra.gmra.mrb[0].mxu0 %v3044_v39 }
 0x57a   : > { %3314 = vmatprep.mubr.msk.bf16.mxu0 %vm4179_vm0, %v4178_v19  ;;  %3299 = vmatpush3.bf16.msra.mxu0 %v3680_v16 }
 0x57b   : > { %3300 = vmatprep.subr.bf16.mxu0 %v4178_v19 }
 0x57e   : > { %3301 = vmatpush3.bf16.msra.mxu0 %v3681_v60 }
 0x57f   : > { %3302 = vmatprep.subr.bf16.mxu0 %v4178_v19 }
 0x582   : > { %3303 = vmatpush3.bf16.msra.mxu0 %v3682_v59 }
 0x583   : > { %3304 = vmatprep.subr.bf16.mxu0 %v4178_v19 }
 0x586   : > { %3305 = vmatpush3.bf16.msra.mxu0 %v3683_v20 }
 0x587   : > { %3306 = vmatprep.subr.bf16.mxu0 %v4178_v19 }
 0x58a   : > { %3307 = vmatpush3.bf16.msra.mxu0 %v3684_v4 }
 0x58b   : > { %3308 = vmatprep.subr.bf16.mxu0 %v4178_v19 }
 0x58e   : > { %3309 = vmatpush3.bf16.msra.mxu0 %v3685_v41 }
 0x58f   : > { %3310 = vmatprep.subr.bf16.mxu0 %v4178_v19 }
 0x592   : > { %3311 = vmatpush3.bf16.msra.mxu0 %v3686_v30 }
 0x593   : > { %3312 = vmatprep.subr.bf16.mxu0 %v4178_v19 }
 0x596   : > { %3313 = vmatpush3.bf16.msra.mxu0 %v3687_v34 }
 0x597   : > { %3338 = vmatprep.subr.bf16.mxu0 %v4178_v19 }
 0x64c   : > { %v3236_v0 = vpop.f32.mrb[0].mxu0 }
 0x64d   : > { %v3237_v42 = vpop.f32.mrb[1].mxu0 }
 0x64e   : > { %v3238_v6 = vadd.f32 %v3237_v42, %v3236_v0  ;;  %v3239_v43 = vpop.f32.mrb[2].mxu0 }
 0x64f   : > { %v3240_v8 = vpop.f32.mrb[3].mxu0 }
 0x650   : > { %v2225_v23 = vpack.c.bf16 %v3238_v6, %v3238_v6 }
 0x652   : > { %3295 = vmatmul.mubr.bf16.vlgmr.msra.gmra.mrb[0].mxu1 %v2225_v23 }
 0x653   : > { %3334 = vmatprep.mubr.msk.bf16.mxu1 %vm4179_vm0, %v4178_v19  ;;  %3319 = vmatpush3.bf16.msra.mxu1 %v3688_v38 }
 0x654   : > { %3320 = vmatprep.subr.bf16.mxu1 %v4178_v19 }
 0x657   : > { %3321 = vmatpush3.bf16.msra.mxu1 %v3689_v52 }
 0x658   : > { %3322 = vmatprep.subr.bf16.mxu1 %v4178_v19 }
 0x65b   : > { %3323 = vmatpush3.bf16.msra.mxu1 %v3690_v31 }
 0x65c   : > { %3324 = vmatprep.subr.bf16.mxu1 %v4178_v19 }
 0x65f   : > { %3325 = vmatpush3.bf16.msra.mxu1 %v3691_v56 }
 0x660   : > { %3326 = vmatprep.subr.bf16.mxu1 %v4178_v19 }
 0x663   : > { %3327 = vmatpush3.bf16.msra.mxu1 %v3692_v32 }
 0x664   : > { %3328 = vmatprep.subr.bf16.mxu1 %v4178_v19 }
 0x667   : > { %3329 = vmatpush3.bf16.msra.mxu1 %v3693_v1 }
 0x668   : > { %3330 = vmatprep.subr.bf16.mxu1 %v4178_v19 }
 0x66b   : > { %3331 = vmatpush3.bf16.msra.mxu1 %v3694_v45 }
 0x66c   : > { %3332 = vmatprep.subr.bf16.mxu1 %v4178_v19 }
 0x66f   : > { %3333 = vmatpush3.bf16.msra.mxu1 %v3695_v28 }
 0x725   : > { %v2331_v10 = vpop.f32.mrb[0].mxu1 }
 0x726   : > { %v2332_v49 = vadd.f32 %v3046_v47, %v2331_v10  ;;  %v3296_v36 = vpop.f32.mrb[1].mxu1 }
 0x727   : > { %v2334_v51 = vpop.f32.mrb[2].mxu1 }
 0x728   : > { %v2337_v40 = vmax.f32 %v2332_v49, 0.0  ;;  %v3297_v14 = vpop.f32.mrb[3].mxu1 }
 0x72a   : > { %v2338_v27 = vpack.c.bf16 %v2337_v40, %v2337_v40 }
 0x72c   : > { %3315 = vmatmul.mubr.bf16.vlgmr.msra.gmra.mrb[4].mxu0 %v2338_v27 }
 0x72d   : > { %3354 = vmatprep.mubr.msk.bf16.mxu0 %vm4179_vm0, %v4178_v19  ;;  %3339 = vmatpush3.bf16.msra.mxu0 %v3696_v62 }
 0x72e   : > { %3340 = vmatprep.subr.bf16.mxu0 %v4178_v19 }
 0x731   : > { %3341 = vmatpush3.bf16.msra.mxu0 %v3697_v3 }
 0x732   : > { %3342 = vmatprep.subr.bf16.mxu0 %v4178_v19 }
 0x735   : > { %3343 = vmatpush3.bf16.msra.mxu0 %v3698_v7 }
 0x736   : > { %3344 = vmatprep.subr.bf16.mxu0 %v4178_v19 }
 0x739   : > { %3345 = vmatpush3.bf16.msra.mxu0 %v3699_v11 }
 0x73a   : > { %3346 = vmatprep.subr.bf16.mxu0 %v4178_v19 }
 0x73d   : > { %3347 = vmatpush3.bf16.msra.mxu0 %v3700_v15 }
 0x73e   : > { %3348 = vmatprep.subr.bf16.mxu0 %v4178_v19 }
 0x741   : > { %3349 = vmatpush3.bf16.msra.mxu0 %v3701_v33 }
 0x742   : > { %3350 = vmatprep.subr.bf16.mxu0 %v4178_v19 }
 0x745   : > { %3351 = vmatpush3.bf16.msra.mxu0 %v3702_v61 }
 0x746   : > { %3352 = vmatprep.subr.bf16.mxu0 %v4178_v19 }
 0x749   : > { %3353 = vmatpush3.bf16.msra.mxu0 %v3703_v54 }
 0x7ff   : > { %v2444_v46 = vpop.f32.mrb[4].mxu0 }
 0x800   : > { %v2445_v48 = vadd.f32 %v3055_v44, %v2444_v46  ;;  %v3316_v50 = vpop.f32.mrb[5].mxu0 }
 0x801   : > { %v2447_v24 = vpop.f32.mrb[6].mxu0 }
 0x802   : > { %v2450_v25 = vpack.c.bf16 %v2445_v48, %v2445_v48  ;;  %2683 = vst [vmem:[#allocation19] sm:$0xff] %v2445_v48  ;;  %v3317_v58 = vpop.f32.mrb[7].mxu0 }
 0x804   : > { %3335 = vmatmul.mubr.bf16.vlgmr.msra.gmra.mrb[4].mxu1 %v2450_v25 }
 0x8d7   : > { %v2556_v9 = vpop.f32.mrb[4].mxu1 }
 0x8d8   : > { %v2557_v29 = vadd.f32 %v3064_v5, %v2556_v9  ;;  %v3336_v35 = vpop.f32.mrb[5].mxu1 }
 0x8d9   : > { %v2559_v18 = vpop.f32.mrb[6].mxu1 }
 0x8da   : > { %v2563_v63 = vand.u32 2147483647, %v2557_v29  ;;  %v3337_v57 = vpop.f32.mrb[7].mxu1  ;;  %v2562_v19 = vmax.f32 %v2557_v29, 0.0 }
 0x8dc   : > { %v2564_v13 = vsub.f32 0.0, %v2563_v63 }
 0x8de   : > { %v2565_v37 = vmul.f32 1.442695, %v2564_v13 }
 0x8e0   : > { %3704 = vpow2.f32 %v2565_v37 }
 0x8ea   : > { %v3705_v17 = vpop.eup %3704 }
 0x8eb   : > { %v2567_v21 = vadd.f32 1.0, %v3705_v17 }
 0x8ed   : > { %3706 = vlog2.f32 %v2567_v21 }
 0x8f7   : > { %v3707_v2 = vpop.eup %3706 }
 0x8f8   : > { %v2569_v26 = vmul.f32 0.6931472, %v3707_v2 }
 0x8fa   : > { %v2570_v22 = vadd.f32 %v2569_v26, %v2562_v19 }
 0x8fc   : > { %v2571_v12 = vpack.c.bf16 %v2570_v22, %v2570_v22 }
 0x8fe   : > { %3355 = vmatmul.mubr.bf16.vlgmr.msra.gmra.mrb[8].mxu0 %v2571_v12 }
 0x9d1   : > { %v2677_v39 = vpop.f32.mrb[8].mxu0 }
 0x9d2   : > { %v2678_v55 = vadd.f32 %v3073_v53, %v2677_v39  ;;  %v3356_v16 = vpop.f32.mrb[9].mxu0 }
 0x9d3   : > { %v2680_v60 = vpop.f32.mrb[10].mxu0 }
 0x9d4   : > { %2684 = vst [vmem:[#allocation20] sm:$0xff] %v2678_v55  ;;  %v3357_v59 = vpop.f32.mrb[11].mxu0 }
 0x9d5 PF: > { %p3450_p7 = scmp.eq.s32.totalorder %s4353_s29, 5  ;;  %s4180_s12 = smov [#allocation19]  }
 0x9d6   : > { %s2692_s11 = sshll.u32 %s4180_s12, 4  ;;  %s4181_s1 = smov [#allocation20]   ;;  %s2693_s11 = int_to_ptr.vmem [resolvable:$true] %s2692_s11 }
 0x9d7   : > { %s2703_s25 = sshll.u32 %s4181_s1, 4  ;;  %s3968_s4 = scalar_lea.vmem %s2693_s11, 128  ;;  %s5474_s25 = int_to_ptr.vmem [resolvable:$true] %s2703_s25 }
 0x9d8   : > { %p3969_p2 = scmp.ne.s32.totalorder %s2693_s11, %s3968_s4  ;;  %p3975_p5 = scmp.lt.s32.totalorder %s2693_s11, %s2693_s11 }
 0x9d9   : > { %p3976_p0 = scmp.lt.s32.totalorder %s3968_s4, %s3968_s4 }
 0x9da   : > { %p3970_p12 = pnand %p3969_p2, %p3450_p7 }
 0x9db   : > { %p3977_p10 = por %p3976_p0, %p3975_p5 }
 0x9dc   : > { %p3971_p6 = pneg %p3970_p12 }
 0x9de   : > { %p3978_p11 = pnand %p3977_p10, %p3971_p6 }
 0x9e0   : > { %3981 = shalt.err (!%p3978_p11)
}
 0x9e1   : > { %s5745_s20 = sld [smem:[#allocation62_spill]] }
 0x9e7   : > { %s5746_s9 = smov %s5745_s20  ;;  %s3982_s18 = scalar_lea.hbm %s5745_s20, 128 }
 0x9e8   : > { %p3983_p3 = scmp.ne.s32.totalorder %s5746_s9, %s3982_s18  ;;  %p3988_p13 = scmp.lt.u32.totalorder %s3982_s18, %s5746_s9 }
 0x9ea   : > { %p3984_p8 = pnand %p3983_p3, %p3450_p7 }
 0x9ec   : > { %p3985_p1 = pneg %p3984_p8 }
 0x9ee   : > { %p3990_p4 = pnand %p3988_p13, %p3985_p1 }
 0x9f0   : > { %3993 = shalt.err (!%p3990_p4)
}
 0x9f1   : > { %3403 = dma.vmem_to_hbm [thread:$0]  (%p3450_p7), %s2693_s11, 128, %s5746_s9, [#allocation6]  }
 0x9f2   : > { %s3994_s7 = scalar_lea.vmem %s5474_s25, 128  ;;  %p4001_p6 = scmp.lt.s32.totalorder %s5474_s25, %s5474_s25 }
 0x9f3   : > { %p3995_p9 = scmp.ne.s32.totalorder %s5474_s25, %s3994_s7  ;;  %p4002_p5 = scmp.lt.s32.totalorder %s3994_s7, %s3994_s7 }
 0x9f5   : > { %p3996_p2 = pnand %p3995_p9, %p3450_p7  ;;  %p4003_p0 = por %p4002_p5, %p4001_p6 }
 0x9f7   : > { %p3997_p12 = pneg %p3996_p2 }
 0x9f9   : > { %p4004_p10 = pnand %p4003_p0, %p3997_p12 }
 0x9fb   : > { %4007 = shalt.err (!%p4004_p10)
}
 0x9fc   : > { %s5747_s3 = sld [smem:[#allocation63_spill]] }
 0xa02   : > { %s5748_s10 = smov %s5747_s3  ;;  %s4008_s23 = scalar_lea.hbm %s5747_s3, 128 }
 0xa03   : > { %p4009_p11 = scmp.ne.s32.totalorder %s5748_s10, %s4008_s23  ;;  %p4014_p1 = scmp.lt.u32.totalorder %s4008_s23, %s5748_s10 }
 0xa05   : > { %p4010_p3 = pnand %p4009_p11, %p3450_p7 }
 0xa07   : > { %p4011_p8 = pneg %p4010_p3 }
 0xa09   : > { %p4016_p13 = pnand %p4014_p1, %p4011_p8 }
 0xa0b   : > { %4019 = shalt.err (!%p4016_p13)
}
 0xa0c   : > { %3405 = dma.vmem_to_hbm [thread:$0]  (%p3450_p7), %s5474_s25, 128, %s5748_s10, [#allocation21]  }
 0xa0d   : > { %4101 = dma.done.wait (%p3450_p7), [#allocation6], 128  }
 0xa0e   : > { %4103 = vsyncadd (%p3450_p7), [#allocation6], 4294967168 }
 0xa0f   : > { %4105 = dma.done.wait (%p3450_p7), [#allocation21], 128  }
 0xa10   : > { %4107 = vsyncadd (%p3450_p7), [#allocation21], 4294967168 }
 0xa11 PF: > { %s41_s28 = sadd.s32 1, %s4162_s28   ;;  %s5750_s0 = sld [smem:[#allocation30_spill]] }
 0xa12   : > { %p5526_p4 = scmp.ge.s32.totalorder %s41_s28, 8   ;;  %s5751_s30 = sld [smem:[#allocation31_spill]] }
 0xa13   : > { %s5752_s25 = sld [smem:[#allocation44_spill]]  ;;  %s5753_s21 = sld [smem:[#allocation33_spill]] }
 0xa14   : > { %s5754_s2 = sld [smem:[#allocation34_spill]]  ;;  %s5755_s23 = sld [smem:[#allocation35_spill]] }
 0xa15   : > { %s5756_s24 = sld [smem:[#allocation41_spill]]  ;;  %s5757_s29 = sld [smem:[#allocation39_spill]] }
 0xa16   : > { %s5758_s18 = sld [smem:[#allocation43_spill]]  ;;  %s5761_s1 = smov %s4130_s22 }
 0xa17   : > { %s5762_s22 = smov %s4674_s14  ;;  %s5764_s3 = smov %s4158_s27 }
 0xa18   :  { %40 = sbr.rel (!%p5526_p4) target bundleno = 35 (0x23), region = 222 }
 0xa19   : > { %s5760_s20 = smov %s5752_s25  ;;  %s5763_s25 = smov %s4154_s26 }
 0xa1b   : > { %s5765_s26 = smov %s5757_s29 }
 0xa1c   : > { %s5766_s27 = smov %s5758_s18 }
 0xa1f   :  { %2720 = vsyncpa [#allocation5], 1 }
 0xa20   :  { %2722 = vsyncpa [#allocation5 + $0x1], 1 }
 0xa21   :  { %2723 = vsyncpa [#allocation8], 1 }
 0xa22   :  { %2725 = vsyncpa [#allocation8 + $0x1], 1 }
 0xa23   :  { %2726 = vsyncpa [#allocation11], 1 }
 0xa24   :  { %2728 = vsyncpa [#allocation11 + $0x1], 1 }
 0xa25   :  { %2729 = vsyncpa [#allocation14], 1 }
 0xa26   :  { %2730 = vsyncpa [#allocation17], 1 }
 0xa27   :  { %2731 = vsyncpa [#allocation6], 1 }
 0xa28   :  { %2733 = vsyncpa [#allocation6 + $0x1], 1 }
 0xa29   :  { %2734 = vsyncpa [#allocation21], 1 }

</bundles_post_ra>
